<compile_context>
chip_gen: v7x
topology: tpu7x:2x2x1
jax: 0.10.0
libtpu: 0.0.40
codegen_flags: <defaults>
</compile_context>

<pallas_src>
import math
import functools

import jax
import jax.numpy as jnp
from jax.experimental import pallas as pl
from jax.experimental.pallas import tpu as pltpu


# ----------------------------- helpers -----------------------------

def _row_tile(M):
    """Row-tile size: single block at toy sizes, 16-multiple tiles otherwise."""
    if M <= 256:
        return M
    for t in (512, 256, 128, 64, 32, 16):
        if M % t == 0:
            return t
    return M


def _parallel(n=1):
    # Mark grid axes parallel so v7x megacore can shard them; harmless on v5e/v6e.
    return pltpu.CompilerParams(dimension_semantics=("parallel",) * n)


def _ln(y, g, b, eps):
    mean = jnp.mean(y, axis=-1, keepdims=True)
    var = jnp.mean(jnp.square(y - mean), axis=-1, keepdims=True)
    return (y - mean) * jax.lax.rsqrt(var + eps) * g + b


# ----------------------------- Pallas kernels -----------------------------

def _linear_kernel(x_ref, w_ref, b_ref, o_ref):
    y = jnp.dot(x_ref[...].astype(jnp.bfloat16), w_ref[...],
                preferred_element_type=jnp.float32) + b_ref[...]
    o_ref[...] = y.astype(o_ref.dtype)


def linear_pallas(x, w, b, out_dtype=jnp.float32):
    """x:[M,K] @ w:[K,N] (bf16, pre-transposed at init) + b:[N]."""
    M, K = x.shape
    N = w.shape[1]
    tm = _row_tile(M)
    return pl.pallas_call(
        _linear_kernel,
        out_shape=jax.ShapeDtypeStruct((M, N), out_dtype),
        grid=(M // tm,),
        in_specs=[pl.BlockSpec((tm, K), lambda i: (i, 0)),
                  pl.BlockSpec((K, N), lambda i: (0, 0)),
                  pl.BlockSpec((1, N), lambda i: (0, 0))],
        out_specs=pl.BlockSpec((tm, N), lambda i: (i, 0)),
        compiler_params=_parallel(),
    )(x, w, b.reshape(1, N))


def _attn_kernel(q_ref, k_ref, v_ref, m_ref, o_ref, *, scale):
    # q:[H,Lq,Dh], k/v:[H,Lk,Dh] (bf16), m:[1,Lq,Lk] additive f32 shared by all heads.
    s = jnp.einsum('hqd,hkd->hqk', q_ref[...], k_ref[...],
                   preferred_element_type=jnp.float32)
    s = s * scale + m_ref[...]
    s = s - jnp.max(s, axis=-1, keepdims=True)
    p = jnp.exp(s)
    p = p * pl.reciprocal(jnp.sum(p, axis=-1, keepdims=True), approx=True)
    o = jnp.einsum('hqk,hkd->hqd', p.astype(jnp.bfloat16), v_ref[...],
                   preferred_element_type=jnp.float32)
    o_ref[...] = o.astype(o_ref.dtype)


def attention_pallas(q, k, v, mask, scale):
    """q:[B*H,Lq,Dh], k/v:[B*H,Lk,Dh] (bf16), mask:[B,Lq,Lk] additive f32.
    Grid over batch; each step handles all heads of one batch element, so the mask
    never needs to be materialized at [B*H,...] size in HBM."""
    BH, Lq, Dh = q.shape
    Lk = k.shape[1]
    B = mask.shape[0]
    H = BH // B
    return pl.pallas_call(
        functools.partial(_attn_kernel, scale=scale),
        out_shape=jax.ShapeDtypeStruct((BH, Lq, Dh), jnp.bfloat16),
        grid=(B,),
        in_specs=[pl.BlockSpec((H, Lq, Dh), lambda i: (i, 0, 0)),
                  pl.BlockSpec((H, Lk, Dh), lambda i: (i, 0, 0)),
                  pl.BlockSpec((H, Lk, Dh), lambda i: (i, 0, 0)),
                  pl.BlockSpec((1, Lq, Lk), lambda i: (i, 0, 0))],
        out_specs=pl.BlockSpec((H, Lq, Dh), lambda i: (i, 0, 0)),
        compiler_params=_parallel(),
    )(q, k, v, mask)


def _outproj_add_ln_kernel(a_ref, res_ref, w_ref, b_ref, g_ref, beta_ref, o_ref, *, eps):
    # out_proj(attn) + residual + LayerNorm fused (one HBM round trip instead of three).
    y = jnp.dot(a_ref[...].astype(jnp.bfloat16), w_ref[...],
                preferred_element_type=jnp.float32) + b_ref[...]
    y = y + res_ref[...]
    o_ref[...] = _ln(y, g_ref[...], beta_ref[...], eps)


def outproj_add_ln_pallas(a, res, w, b, gamma, beta, eps=1e-5):
    M, E = res.shape
    tm = _row_tile(M)
    return pl.pallas_call(
        functools.partial(_outproj_add_ln_kernel, eps=eps),
        out_shape=jax.ShapeDtypeStruct((M, E), jnp.float32),
        grid=(M // tm,),
        in_specs=[pl.BlockSpec((tm, E), lambda i: (i, 0)),
                  pl.BlockSpec((tm, E), lambda i: (i, 0)),
                  pl.BlockSpec((E, E), lambda i: (0, 0)),
                  pl.BlockSpec((1, E), lambda i: (0, 0)),
                  pl.BlockSpec((1, E), lambda i: (0, 0)),
                  pl.BlockSpec((1, E), lambda i: (0, 0))],
        out_specs=pl.BlockSpec((tm, E), lambda i: (i, 0)),
        compiler_params=_parallel(),
    )(a, res, w, b.reshape(1, E), gamma.reshape(1, E), beta.reshape(1, E))


def _ffn_in_kernel(x_ref, w_ref, b_ref, g_ref, beta_ref, o_ref, *, eps):
    # linear1 + ReLU + LayerNorm(hidden_dim) fused.
    y = jnp.dot(x_ref[...].astype(jnp.bfloat16), w_ref[...],
                preferred_element_type=jnp.float32) + b_ref[...]
    y = jnp.maximum(y, 0.0)
    # TODO(synk): nn.Dropout(0.1) after the norm is treated as eval-mode identity.
    o_ref[...] = _ln(y, g_ref[...], beta_ref[...], eps)


def ffn_in_pallas(x, w, b, gamma, beta, eps=1e-5):
    M, E = x.shape
    Hd = w.shape[1]
    tm = _row_tile(M)
    return pl.pallas_call(
        functools.partial(_ffn_in_kernel, eps=eps),
        out_shape=jax.ShapeDtypeStruct((M, Hd), jnp.float32),
        grid=(M // tm,),
        in_specs=[pl.BlockSpec((tm, E), lambda i: (i, 0)),
                  pl.BlockSpec((E, Hd), lambda i: (0, 0)),
                  pl.BlockSpec((1, Hd), lambda i: (0, 0)),
                  pl.BlockSpec((1, Hd), lambda i: (0, 0)),
                  pl.BlockSpec((1, Hd), lambda i: (0, 0))],
        out_specs=pl.BlockSpec((tm, Hd), lambda i: (i, 0)),
        compiler_params=_parallel(),
    )(x, w, b.reshape(1, Hd), gamma.reshape(1, Hd), beta.reshape(1, Hd))


def _ffn_out_kernel(x_ref, res_ref, w_ref, b_ref, g_ref, beta_ref, o_ref, *, eps):
    # linear2 + residual + LayerNorm fused.
    y = jnp.dot(x_ref[...].astype(jnp.bfloat16), w_ref[...],
                preferred_element_type=jnp.float32) + b_ref[...]
    y = y + res_ref[...]
    o_ref[...] = _ln(y, g_ref[...], beta_ref[...], eps)


def ffn_out_pallas(ff, res, w, b, gamma, beta, eps=1e-5):
    M, Hd = ff.shape
    E = w.shape[1]
    tm = _row_tile(M)
    return pl.pallas_call(
        functools.partial(_ffn_out_kernel, eps=eps),
        out_shape=jax.ShapeDtypeStruct((M, E), jnp.float32),
        grid=(M // tm,),
        in_specs=[pl.BlockSpec((tm, Hd), lambda i: (i, 0)),
                  pl.BlockSpec((tm, E), lambda i: (i, 0)),
                  pl.BlockSpec((Hd, E), lambda i: (0, 0)),
                  pl.BlockSpec((1, E), lambda i: (0, 0)),
                  pl.BlockSpec((1, E), lambda i: (0, 0)),
                  pl.BlockSpec((1, E), lambda i: (0, 0))],
        out_specs=pl.BlockSpec((tm, E), lambda i: (i, 0)),
        compiler_params=_parallel(),
    )(ff, res, w, b.reshape(1, E), gamma.reshape(1, E), beta.reshape(1, E))


# ------------------------- model building blocks -------------------------

def _split_heads(x2d, L, B, H, Dh):
    # [L*B, H*Dh] -> [B*H, L, Dh] (same ordering as torch MHA: view + transpose(0,1))
    return x2d.reshape(L, B * H, Dh).transpose(1, 0, 2)


def _merge_heads(o, L, B, H, Dh):
    # [B*H, L, Dh] -> [L*B, H*Dh]
    return o.transpose(1, 0, 2).reshape(L * B, H * Dh)


def self_attention_block(p, x, mask, num_heads, ln_w, ln_b):
    """Fused-QKV self-attention + residual + LayerNorm.  x:[L,B,E], mask:[B,L,L]."""
    L, B, E = x.shape
    H = num_heads
    Dh = E // H
    x2d = x.reshape(L * B, E)
    qkv = linear_pallas(x2d, p['wqkv'], p['bqkv'], out_dtype=jnp.bfloat16)   # [L*B, 3E]
    q = _split_heads(qkv[:, :E], L, B, H, Dh)
    k = _split_heads(qkv[:, E:2 * E], L, B, H, Dh)
    v = _split_heads(qkv[:, 2 * E:], L, B, H, Dh)
    o = attention_pallas(q, k, v, mask, 1.0 / math.sqrt(Dh))                 # [B*H, L, Dh]
    o = _merge_heads(o, L, B, H, Dh)
    out = outproj_add_ln_pallas(o, x2d, p['wo'], p['bo'], ln_w, ln_b)        # LN(proj + x)
    return out.reshape(L, B, E)


def cross_attention_block(p, x, mem, mask, num_heads, ln_w, ln_b):
    """Cross-attention (fused KV proj) + residual + LayerNorm."""
    Lq, B, E = x.shape
    Lk = mem.shape[0]
    H = num_heads
    Dh = E // H
    x2d = x.reshape(Lq * B, E)
    mem2d = mem.reshape(Lk * B, E)
    q = linear_pallas(x2d, p['wq'], p['bq'], out_dtype=jnp.bfloat16)         # [Lq*B, E]
    kv = linear_pallas(mem2d, p['wkv'], p['bkv'], out_dtype=jnp.bfloat16)    # [Lk*B, 2E]
    q = _split_heads(q, Lq, B, H, Dh)
    k = _split_heads(kv[:, :E], Lk, B, H, Dh)
    v = _split_heads(kv[:, E:], Lk, B, H, Dh)
    o = attention_pallas(q, k, v, mask, 1.0 / math.sqrt(Dh))                 # [B*H, Lq, Dh]
    o = _merge_heads(o, Lq, B, H, Dh)
    out = outproj_add_ln_pallas(o, x2d, p['wo'], p['bo'], ln_w, ln_b)
    return out.reshape(Lq, B, E)


def encoder_layer_fwd(p, x, src_mask, num_heads):
    L, B, E = x.shape
    h = self_attention_block(p['attn'], x, src_mask, num_heads,
                             p['norm1_w'], p['norm1_b'])                      # LN(MHA(x)+x)
    h2d = h.reshape(L * B, E)
    ff = ffn_in_pallas(h2d, p['w1'], p['b1'], p['norm2_w'], p['norm2_b'])     # LN(relu(lin1))
    out = ffn_out_pallas(ff, h2d, p['w2'], p['b2'], p['norm3_w'], p['norm3_b'])
    return out.reshape(L, B, E)


def decoder_layer_fwd(p, x, mem, trg_mask, cross_mask, num_heads):
    L, B, E = x.shape
    h = self_attention_block(p['self_attn'], x, trg_mask, num_heads,
                             p['norm1_w'], p['norm1_b'])
    h2 = cross_attention_block(p['cross_attn'], h, mem, cross_mask, num_heads,
                               p['norm2_w'], p['norm2_b'])
    h2d = h2.reshape(L * B, E)
    ff = ffn_in_pallas(h2d, p['w1'], p['b1'], p['norm3_w'], p['norm3_b'])
    out = ffn_out_pallas(ff, h2d, p['w2'], p['b2'], p['norm4_w'], p['norm4_b'])
    return out.reshape(L, B, E)


def positional_encoding(d_model, max_len=64):
    position = jnp.arange(max_len, dtype=jnp.float32)[:, None]
    div_term = jnp.exp(jnp.arange(0, d_model, 2, dtype=jnp.float32)
                       * (-math.log(10000.0) / d_model))
    pe = jnp.zeros((max_len, 1, d_model), jnp.float32)
    pe = pe.at[:, 0, 0::2].set(jnp.sin(position * div_term))
    pe = pe.at[:, 0, 1::2].set(jnp.cos(position * div_term))
    return pe


def transformer_fwd(params, src_x, trg_x, src_kpm, trg_kpm, trg_attn_mask,
                    enc_heads, dec_heads):
    Ls, B = src_x.shape
    Lt = trg_x.shape[0]

    # additive masks at [B, Lq, Lk] (per-head broadcast happens inside the kernel)
    src_bias = jnp.where(src_kpm, -1e9, 0.0).astype(jnp.float32)              # [B, Ls]
    enc_mask = jnp.broadcast_to(src_bias[:, None, :], (B, Ls, Ls))
    cross_mask = jnp.broadcast_to(src_bias[:, None, :], (B, Lt, Ls))
    trg_bias = jnp.where(trg_kpm, -1e9, 0.0).astype(jnp.float32)              # [B, Lt]
    dec_mask = jnp.broadcast_to(trg_bias[:, None, :] + trg_attn_mask[None],
                                (B, Lt, Lt))

    pe = params['pe']
    trg = jnp.take(params['trg_embedding'], trg_x, axis=0) + pe[:Lt]          # [Lt, B, E]
    src = jnp.take(params['src_embedding'], src_x, axis=0) + pe[:Ls]          # [Ls, B, E]

    for lp in params['encoder']:
        src = encoder_layer_fwd(lp, src, enc_mask, enc_heads)
    for lp in params['decoder']:
        trg = decoder_layer_fwd(lp, trg, src, dec_mask, cross_mask, dec_heads)

    E = trg.shape[-1]
    out = linear_pallas(trg.reshape(Lt * B, E), params['out_w'], params['out_b'])
    return out.reshape(Lt, B, -1)


# ----------------------------- parameter init -----------------------------
# Weights used on the MXU are stored pre-transposed ([K, N]) in bf16; biases and
# LayerNorm parameters stay f32.

def _init_linear_t(key, in_dim, out_dim):
    k1, k2 = jax.random.split(key)
    bound = 1.0 / math.sqrt(in_dim)
    w = jax.random.uniform(k1, (out_dim, in_dim), jnp.float32, -bound, bound)
    b = jax.random.uniform(k2, (out_dim,), jnp.float32, -bound, bound)
    return w.T.astype(jnp.bfloat16), b


def _init_mha(key, E):
    k1, k2 = jax.random.split(key)
    limit = math.sqrt(6.0 / (3 * E + E))                    # xavier_uniform on [3E, E]
    w_in = jax.random.uniform(k1, (3 * E, E), jnp.float32, -limit, limit)
    b_in = jnp.zeros((3 * E,), jnp.float32)
    wqkv = w_in.T                                           # [E, 3E]
    wo, _ = _init_linear_t(k2, E, E)
    return {
        'wqkv': wqkv.astype(jnp.bfloat16), 'bqkv': b_in,
        'wq': wqkv[:, :E].astype(jnp.bfloat16), 'bq': b_in[:E],
        'wkv': wqkv[:, E:].astype(jnp.bfloat16), 'bkv': b_in[E:],
        'wo': wo, 'bo': jnp.zeros((E,), jnp.float32),
    }


def _init_encoder_layer(key, E, Hd):
    ks = jax.random.split(key, 3)
    w1, b1 = _init_linear_t(ks[1], E, Hd)
    w2, b2 = _init_linear_t(ks[2], Hd, E)
    return {
        'attn': _init_mha(ks[0], E),
        'w1': w1, 'b1': b1, 'w2': w2, 'b2': b2,
        'norm1_w': jnp.ones((E,)), 'norm1_b': jnp.zeros((E,)),
        'norm2_w': jnp.ones((Hd,)), 'norm2_b': jnp.zeros((Hd,)),
        'norm3_w': jnp.ones((E,)), 'norm3_b': jnp.zeros((E,)),
    }


def _init_decoder_layer(key, E, Hd):
    ks = jax.random.split(key, 4)
    w1, b1 = _init_linear_t(ks[2], E, Hd)
    w2, b2 = _init_linear_t(ks[3], Hd, E)
    return {
        'self_attn': _init_mha(ks[0], E),
        'cross_attn': _init_mha(ks[1], E),
        'w1': w1, 'b1': b1, 'w2': w2, 'b2': b2,
        'norm1_w': jnp.ones((E,)), 'norm1_b': jnp.zeros((E,)),
        'norm2_w': jnp.ones((E,)), 'norm2_b': jnp.zeros((E,)),
        'norm3_w': jnp.ones((Hd,)), 'norm3_b': jnp.zeros((Hd,)),
        'norm4_w': jnp.ones((E,)), 'norm4_b': jnp.zeros((E,)),
    }


def init_transformer(key, embed_dim, enc_hidden, dec_hidden,
                     enc_layers, dec_layers, src_vocab, trg_vocab, max_len=64):
    keys = jax.random.split(key, 4 + enc_layers + dec_layers)
    src_emb = jax.random.normal(keys[0], (src_vocab, embed_dim), jnp.float32).at[0].set(0.0)
    trg_emb = jax.random.normal(keys[1], (trg_vocab, embed_dim), jnp.float32).at[0].set(0.0)
    out_w, out_b = _init_linear_t(keys[2], embed_dim, trg_vocab)
    return {
        'src_embedding': src_emb,
        'trg_embedding': trg_emb,
        'pe': positional_encoding(embed_dim, max_len),
        'encoder': [_init_encoder_layer(keys[4 + i], embed_dim, enc_hidden)
                    for i in range(enc_layers)],
        'decoder': [_init_decoder_layer(keys[4 + enc_layers + i], embed_dim, dec_hidden)
                    for i in range(dec_layers)],
        'out_w': out_w, 'out_b': out_b,
    }


# ---------------------------------- main ----------------------------------

if __name__ == "__main__":
    embed_dim = 32
    enc_hidden = 64
    dec_hidden = 64
    enc_heads = 4
    dec_heads = 4
    enc_layers = 2
    dec_layers = 2
    src_vocab = 50
    trg_vocab = 48
    src_len, trg_len, batch = 8, 8, 2

    root = jax.random.PRNGKey(0)
    k_params, k_src, k_trg = jax.random.split(root, 3)

    params = init_transformer(k_params, embed_dim, enc_hidden, dec_hidden,
                              enc_layers, dec_layers, src_vocab, trg_vocab)

    # token ids [seq_len, batch] (0 is the padding id)
    src_x = jax.random.randint(k_src, (src_len, batch), 0, src_vocab, dtype=jnp.int32)
    trg_x = jax.random.randint(k_trg, (trg_len, batch), 0, trg_vocab, dtype=jnp.int32)

    # key padding masks [batch, seq_len]: True = ignore
    src_kpm = jnp.zeros((batch, src_len), dtype=bool).at[1, -1].set(True)
    trg_kpm = jnp.zeros((batch, trg_len), dtype=bool).at[1, -1].set(True)

    # causal additive float mask [trg_len, trg_len]
    causal = jnp.triu(jnp.ones((trg_len, trg_len), jnp.float32), k=1)
    trg_attn_mask = jnp.where(causal > 0, -1e9, 0.0).astype(jnp.float32)

    fwd = jax.jit(functools.partial(transformer_fwd,
                                    enc_heads=enc_heads, dec_heads=dec_heads))
    out = fwd(params, src_x, trg_x, src_kpm, trg_kpm, trg_attn_mask)
    out = jax.block_until_ready(out)

    assert out.shape == (trg_len, batch, trg_vocab), out.shape
    assert bool(jnp.all(jnp.isfinite(out)))
    print("KERNEL_OK")
</pallas_src>

<mosaic_0001>
module attributes {stable_mosaic.version = 11 : i64} {
  func.func @_linear_kernel(%arg0: i32, %arg1: memref<16x32xf32, #tpu.memory_space<vmem>>, %arg2: memref<32x96xbf16, #tpu.memory_space<vmem>>, %arg3: memref<1x96xf32, #tpu.memory_space<vmem>>, %arg4: memref<16x96xbf16, #tpu.memory_space<vmem>>) attributes {dimension_semantics = [#tpu.dimension_semantics<parallel>], iteration_bounds = array<i64: 1>, scalar_prefetch = 0 : i64, scratch_operands = 0 : i64, tpu.core_type = #tpu.core_type<tc>, window_params = [{transform_indices = @transform_0, window_bounds = array<i64: 16, 32>}, {pipeline_mode = #tpu.pipeline_mode<synchronous>, transform_indices = @transform_1, window_bounds = array<i64: 32, 96>}, {pipeline_mode = #tpu.pipeline_mode<synchronous>, transform_indices = @transform_2, window_bounds = array<i64: 1, 96>}, {transform_indices = @transform_3, window_bounds = array<i64: 16, 96>}]} {
    %c0 = arith.constant 0 : index
    %c0_0 = arith.constant 0 : index
    %0 = vector.load %arg1[%c0, %c0_0] : memref<16x32xf32, #tpu.memory_space<vmem>>, vector<16x32xf32>
    %1 = arith.truncf %0 : vector<16x32xf32> to vector<16x32xbf16>
    %c0_1 = arith.constant 0 : index
    %c0_2 = arith.constant 0 : index
    %2 = vector.load %arg2[%c0_1, %c0_2] : memref<32x96xbf16, #tpu.memory_space<vmem>>, vector<32x96xbf16>
    %cst = arith.constant dense<0.000000e+00> : vector<16x96xf32>
    %3 = tpu.matmul %1, %2, %cst {dimension_numbers = #tpu.dot_dimension_numbers<[1], [0], [0], [1], [0, 0, 1, 1], [], []>} : vector<16x32xbf16>, vector<32x96xbf16>, vector<16x96xf32> -> vector<16x96xf32>
    %c0_3 = arith.constant 0 : index
    %c0_4 = arith.constant 0 : index
    %4 = vector.load %arg3[%c0_3, %c0_4] : memref<1x96xf32, #tpu.memory_space<vmem>>, vector<1x96xf32>
    %5 = vector.broadcast %4 : vector<1x96xf32> to vector<16x96xf32>
    %6 = arith.addf %3, %5 : vector<16x96xf32>
    %7 = arith.truncf %6 : vector<16x96xf32> to vector<16x96xbf16>
    %c0_5 = arith.constant 0 : index
    %c0_6 = arith.constant 0 : index
    %8 = vector.load %arg4[%c0_5, %c0_6] : memref<16x96xbf16, #tpu.memory_space<vmem>>, vector<16x96xbf16>
    tpu.vector_store %arg4[%c0_5, %c0_6], %7 {strides = array<i32>} : memref<16x96xbf16, #tpu.memory_space<vmem>>, vector<16x96xbf16>,
    return
  }
  func.func @transform_0(%arg0: i32) -> (i32, i32) {
    %c0_i32 = arith.constant 0 : i32
    %c0_i32_0 = arith.constant 0 : i32
    return %arg0, %c0_i32 : i32, i32
  }
  func.func @transform_1(%arg0: i32) -> (i32, i32) {
    %c0_i32 = arith.constant 0 : i32
    %c0_i32_0 = arith.constant 0 : i32
    %c0_i32_1 = arith.constant 0 : i32
    return %c0_i32, %c0_i32_0 : i32, i32
  }
  func.func @transform_2(%arg0: i32) -> (i32, i32) {
    %c0_i32 = arith.constant 0 : i32
    %c0_i32_0 = arith.constant 0 : i32
    %c0_i32_1 = arith.constant 0 : i32
    return %c0_i32, %c0_i32_0 : i32, i32
  }
  func.func @transform_3(%arg0: i32) -> (i32, i32) {
    %c0_i32 = arith.constant 0 : i32
    %c0_i32_0 = arith.constant 0 : i32
    return %arg0, %c0_i32 : i32, i32
  }
}

module attributes {stable_mosaic.version = 11 : i64} {
  func.func @_attn_kernel(%arg0: i32, %arg1: memref<4x8x8xbf16, #tpu.memory_space<vmem>>, %arg2: memref<4x8x8xbf16, #tpu.memory_space<vmem>>, %arg3: memref<4x8x8xbf16, #tpu.memory_space<vmem>>, %arg4: memref<1x8x8xf32, #tpu.memory_space<vmem>>, %arg5: memref<4x8x8xbf16, #tpu.memory_space<vmem>>) attributes {dimension_semantics = [#tpu.dimension_semantics<parallel>], iteration_bounds = array<i64: 2>, scalar_prefetch = 0 : i64, scratch_operands = 0 : i64, tpu.core_type = #tpu.core_type<tc>, window_params = [{transform_indices = @transform_0, window_bounds = array<i64: 4, 8, 8>}, {transform_indices = @transform_1, window_bounds = array<i64: 4, 8, 8>}, {transform_indices = @transform_2, window_bounds = array<i64: 4, 8, 8>}, {transform_indices = @transform_3, window_bounds = array<i64: 1, 8, 8>}, {transform_indices = @transform_4, window_bounds = array<i64: 4, 8, 8>}]} {
    %c0 = arith.constant 0 : index
    %c0_0 = arith.constant 0 : index
    %c0_1 = arith.constant 0 : index
    %0 = vector.load %arg1[%c0, %c0_0, %c0_1] : memref<4x8x8xbf16, #tpu.memory_space<vmem>>, vector<4x8x8xbf16>
    %c0_2 = arith.constant 0 : index
    %c0_3 = arith.constant 0 : index
    %c0_4 = arith.constant 0 : index
    %1 = vector.load %arg2[%c0_2, %c0_3, %c0_4] : memref<4x8x8xbf16, #tpu.memory_space<vmem>>, vector<4x8x8xbf16>
    "tpu.trace_start"() <{level = 10 : i32, message = "hqd,hkd->hqk"}> : () -> ()
    %cst = arith.constant dense<0.000000e+00> : vector<4x8x8xf32>
    %2 = tpu.matmul %0, %1, %cst {dimension_numbers = #tpu.dot_dimension_numbers<[2], [2], [1], [1], [0, 0, 0, 1, 1, 1], [0], [0]>} : vector<4x8x8xbf16>, vector<4x8x8xbf16>, vector<4x8x8xf32> -> vector<4x8x8xf32>
    "tpu.trace_stop"() : () -> ()
    %cst_5 = arith.constant 0.353553385 : f32
    %3 = vector.broadcast %cst_5 : f32 to vector<4x8x8xf32>
    %4 = arith.mulf %2, %3 : vector<4x8x8xf32>
    %c0_6 = arith.constant 0 : index
    %c0_7 = arith.constant 0 : index
    %c0_8 = arith.constant 0 : index
    %5 = vector.load %arg4[%c0_6, %c0_7, %c0_8] : memref<1x8x8xf32, #tpu.memory_space<vmem>>, vector<1x8x8xf32>
    %6 = vector.broadcast %5 : vector<1x8x8xf32> to vector<4x8x8xf32>
    %7 = arith.addf %4, %6 : vector<4x8x8xf32>
    %cst_9 = arith.constant dense<0xFF800000> : vector<4x8xf32>
    %8 = vector.multi_reduction <maximumf>, %7, %cst_9 [2] : vector<4x8x8xf32> to vector<4x8xf32>
    %9 = vector.shape_cast %8 : vector<4x8xf32> to vector<4x8x1xf32>
    %10 = vector.broadcast %9 : vector<4x8x1xf32> to vector<4x8x8xf32>
    %11 = arith.subf %7, %10 : vector<4x8x8xf32>
    %12 = math.exp %11 : vector<4x8x8xf32>
    %cst_10 = arith.constant dense<0.000000e+00> : vector<4x8xf32>
    %13 = vector.multi_reduction <add>, %12, %cst_10 [2] : vector<4x8x8xf32> to vector<4x8xf32>
    %14 = vector.shape_cast %13 : vector<4x8xf32> to vector<4x8x1xf32>
    %15 = tpu.reciprocal %14 {approx = true} : vector<4x8x1xf32> -> vector<4x8x1xf32>
    %16 = vector.broadcast %15 : vector<4x8x1xf32> to vector<4x8x8xf32>
    %17 = arith.mulf %12, %16 : vector<4x8x8xf32>
    %18 = arith.truncf %17 : vector<4x8x8xf32> to vector<4x8x8xbf16>
    %c0_11 = arith.constant 0 : index
    %c0_12 = arith.constant 0 : index
    %c0_13 = arith.constant 0 : index
    %19 = vector.load %arg3[%c0_11, %c0_12, %c0_13] : memref<4x8x8xbf16, #tpu.memory_space<vmem>>, vector<4x8x8xbf16>
    "tpu.trace_start"() <{level = 10 : i32, message = "hqk,hkd->hqd"}> : () -> ()
    %cst_14 = arith.constant dense<0.000000e+00> : vector<4x8x8xf32>
    %20 = tpu.matmul %18, %19, %cst_14 {dimension_numbers = #tpu.dot_dimension_numbers<[2], [1], [1], [2], [0, 0, 0, 1, 1, 2], [0], [0]>} : vector<4x8x8xbf16>, vector<4x8x8xbf16>, vector<4x8x8xf32> -> vector<4x8x8xf32>
    "tpu.trace_stop"() : () -> ()
    %21 = arith.truncf %20 : vector<4x8x8xf32> to vector<4x8x8xbf16>
    %c0_15 = arith.constant 0 : index
    %c0_16 = arith.constant 0 : index
    %c0_17 = arith.constant 0 : index
    %22 = vector.load %arg5[%c0_15, %c0_16, %c0_17] : memref<4x8x8xbf16, #tpu.memory_space<vmem>>, vector<4x8x8xbf16>
    tpu.vector_store %arg5[%c0_15, %c0_16, %c0_17], %21 {strides = array<i32>} : memref<4x8x8xbf16, #tpu.memory_space<vmem>>, vector<4x8x8xbf16>,
    return
  }
  func.func @transform_0(%arg0: i32) -> (i32, i32, i32) {
    %c0_i32 = arith.constant 0 : i32
    %c0_i32_0 = arith.constant 0 : i32
    %c0_i32_1 = arith.constant 0 : i32
    return %arg0, %c0_i32, %c0_i32_0 : i32, i32, i32
  }
  func.func @transform_1(%arg0: i32) -> (i32, i32, i32) {
    %c0_i32 = arith.constant 0 : i32
    %c0_i32_0 = arith.constant 0 : i32
    %c0_i32_1 = arith.constant 0 : i32
    return %arg0, %c0_i32, %c0_i32_0 : i32, i32, i32
  }
  func.func @transform_2(%arg0: i32) -> (i32, i32, i32) {
    %c0_i32 = arith.constant 0 : i32
    %c0_i32_0 = arith.constant 0 : i32
    %c0_i32_1 = arith.constant 0 : i32
    return %arg0, %c0_i32, %c0_i32_0 : i32, i32, i32
  }
  func.func @transform_3(%arg0: i32) -> (i32, i32, i32) {
    %c0_i32 = arith.constant 0 : i32
    %c0_i32_0 = arith.constant 0 : i32
    %c0_i32_1 = arith.constant 0 : i32
    return %arg0, %c0_i32, %c0_i32_0 : i32, i32, i32
  }
  func.func @transform_4(%arg0: i32) -> (i32, i32, i32) {
    %c0_i32 = arith.constant 0 : i32
    %c0_i32_0 = arith.constant 0 : i32
    %c0_i32_1 = arith.constant 0 : i32
    return %arg0, %c0_i32, %c0_i32_0 : i32, i32, i32
  }
}

module attributes {stable_mosaic.version = 11 : i64} {
  func.func @_linear_kernel(%arg0: i32, %arg1: memref<16x32xf32, #tpu.memory_space<vmem>>, %arg2: memref<32x32xbf16, #tpu.memory_space<vmem>>, %arg3: memref<1x32xf32, #tpu.memory_space<vmem>>, %arg4: memref<16x32xbf16, #tpu.memory_space<vmem>>) attributes {dimension_semantics = [#tpu.dimension_semantics<parallel>], iteration_bounds = array<i64: 1>, scalar_prefetch = 0 : i64, scratch_operands = 0 : i64, tpu.core_type = #tpu.core_type<tc>, window_params = [{transform_indices = @transform_0, window_bounds = array<i64: 16, 32>}, {pipeline_mode = #tpu.pipeline_mode<synchronous>, transform_indices = @transform_1, window_bounds = array<i64: 32, 32>}, {pipeline_mode = #tpu.pipeline_mode<synchronous>, transform_indices = @transform_2, window_bounds = array<i64: 1, 32>}, {transform_indices = @transform_3, window_bounds = array<i64: 16, 32>}]} {
    %c0 = arith.constant 0 : index
    %c0_0 = arith.constant 0 : index
    %0 = vector.load %arg1[%c0, %c0_0] : memref<16x32xf32, #tpu.memory_space<vmem>>, vector<16x32xf32>
    %1 = arith.truncf %0 : vector<16x32xf32> to vector<16x32xbf16>
    %c0_1 = arith.constant 0 : index
    %c0_2 = arith.constant 0 : index
    %2 = vector.load %arg2[%c0_1, %c0_2] : memref<32x32xbf16, #tpu.memory_space<vmem>>, vector<32x32xbf16>
    %cst = arith.constant dense<0.000000e+00> : vector<16x32xf32>
    %3 = tpu.matmul %1, %2, %cst {dimension_numbers = #tpu.dot_dimension_numbers<[1], [0], [0], [1], [0, 0, 1, 1], [], []>} : vector<16x32xbf16>, vector<32x32xbf16>, vector<16x32xf32> -> vector<16x32xf32>
    %c0_3 = arith.constant 0 : index
    %c0_4 = arith.constant 0 : index
    %4 = vector.load %arg3[%c0_3, %c0_4] : memref<1x32xf32, #tpu.memory_space<vmem>>, vector<1x32xf32>
    %5 = vector.broadcast %4 : vector<1x32xf32> to vector<16x32xf32>
    %6 = arith.addf %3, %5 : vector<16x32xf32>
    %7 = arith.truncf %6 : vector<16x32xf32> to vector<16x32xbf16>
    %c0_5 = arith.constant 0 : index
    %c0_6 = arith.constant 0 : index
    %8 = vector.load %arg4[%c0_5, %c0_6] : memref<16x32xbf16, #tpu.memory_space<vmem>>, vector<16x32xbf16>
    tpu.vector_store %arg4[%c0_5, %c0_6], %7 {strides = array<i32>} : memref<16x32xbf16, #tpu.memory_space<vmem>>, vector<16x32xbf16>,
    return
  }
  func.func @transform_0(%arg0: i32) -> (i32, i32) {
    %c0_i32 = arith.constant 0 : i32
    %c0_i32_0 = arith.constant 0 : i32
    return %arg0, %c0_i32 : i32, i32
  }
  func.func @transform_1(%arg0: i32) -> (i32, i32) {
    %c0_i32 = arith.constant 0 : i32
    %c0_i32_0 = arith.constant 0 : i32
    %c0_i32_1 = arith.constant 0 : i32
    return %c0_i32, %c0_i32_0 : i32, i32
  }
  func.func @transform_2(%arg0: i32) -> (i32, i32) {
    %c0_i32 = arith.constant 0 : i32
    %c0_i32_0 = arith.constant 0 : i32
    %c0_i32_1 = arith.constant 0 : i32
    return %c0_i32, %c0_i32_0 : i32, i32
  }
  func.func @transform_3(%arg0: i32) -> (i32, i32) {
    %c0_i32 = arith.constant 0 : i32
    %c0_i32_0 = arith.constant 0 : i32
    return %arg0, %c0_i32 : i32, i32
  }
}

module attributes {stable_mosaic.version = 11 : i64} {
  func.func @_outproj_add_ln_kernel(%arg0: i32, %arg1: memref<16x32xbf16, #tpu.memory_space<vmem>>, %arg2: memref<16x32xf32, #tpu.memory_space<vmem>>, %arg3: memref<32x32xbf16, #tpu.memory_space<vmem>>, %arg4: memref<1x32xf32, #tpu.memory_space<vmem>>, %arg5: memref<1x32xf32, #tpu.memory_space<vmem>>, %arg6: memref<1x32xf32, #tpu.memory_space<vmem>>, %arg7: memref<16x32xf32, #tpu.memory_space<vmem>>) attributes {dimension_semantics = [#tpu.dimension_semantics<parallel>], iteration_bounds = array<i64: 1>, scalar_prefetch = 0 : i64, scratch_operands = 0 : i64, tpu.core_type = #tpu.core_type<tc>, window_params = [{transform_indices = @transform_0, window_bounds = array<i64: 16, 32>}, {transform_indices = @transform_1, window_bounds = array<i64: 16, 32>}, {pipeline_mode = #tpu.pipeline_mode<synchronous>, transform_indices = @transform_2, window_bounds = array<i64: 32, 32>}, {pipeline_mode = #tpu.pipeline_mode<synchronous>, transform_indices = @transform_3, window_bounds = array<i64: 1, 32>}, {pipeline_mode = #tpu.pipeline_mode<synchronous>, transform_indices = @transform_4, window_bounds = array<i64: 1, 32>}, {pipeline_mode = #tpu.pipeline_mode<synchronous>, transform_indices = @transform_5, window_bounds = array<i64: 1, 32>}, {transform_indices = @transform_6, window_bounds = array<i64: 16, 32>}]} {
    %c0 = arith.constant 0 : index
    %c0_0 = arith.constant 0 : index
    %0 = vector.load %arg1[%c0, %c0_0] : memref<16x32xbf16, #tpu.memory_space<vmem>>, vector<16x32xbf16>
    %c0_1 = arith.constant 0 : index
    %c0_2 = arith.constant 0 : index
    %1 = vector.load %arg3[%c0_1, %c0_2] : memref<32x32xbf16, #tpu.memory_space<vmem>>, vector<32x32xbf16>
    %cst = arith.constant dense<0.000000e+00> : vector<16x32xf32>
    %2 = tpu.matmul %0, %1, %cst {dimension_numbers = #tpu.dot_dimension_numbers<[1], [0], [0], [1], [0, 0, 1, 1], [], []>} : vector<16x32xbf16>, vector<32x32xbf16>, vector<16x32xf32> -> vector<16x32xf32>
    %c0_3 = arith.constant 0 : index
    %c0_4 = arith.constant 0 : index
    %3 = vector.load %arg4[%c0_3, %c0_4] : memref<1x32xf32, #tpu.memory_space<vmem>>, vector<1x32xf32>
    %4 = vector.broadcast %3 : vector<1x32xf32> to vector<16x32xf32>
    %5 = arith.addf %2, %4 : vector<16x32xf32>
    %c0_5 = arith.constant 0 : index
    %c0_6 = arith.constant 0 : index
    %6 = vector.load %arg2[%c0_5, %c0_6] : memref<16x32xf32, #tpu.memory_space<vmem>>, vector<16x32xf32>
    %7 = arith.addf %5, %6 : vector<16x32xf32>
    %c0_7 = arith.constant 0 : index
    %c0_8 = arith.constant 0 : index
    %8 = vector.load %arg5[%c0_7, %c0_8] : memref<1x32xf32, #tpu.memory_space<vmem>>, vector<1x32xf32>
    %c0_9 = arith.constant 0 : index
    %c0_10 = arith.constant 0 : index
    %9 = vector.load %arg6[%c0_9, %c0_10] : memref<1x32xf32, #tpu.memory_space<vmem>>, vector<1x32xf32>
    %cst_11 = arith.constant dense<0.000000e+00> : vector<16xf32>
    %10 = vector.multi_reduction <add>, %7, %cst_11 [1] : vector<16x32xf32> to vector<16xf32>
    %11 = vector.shape_cast %10 : vector<16xf32> to vector<16x1xf32>
    %cst_12 = arith.constant 3.200000e+01 : f32
    %12 = vector.broadcast %cst_12 : f32 to vector<16x1xf32>
    %13 = arith.divf %11, %12 : vector<16x1xf32>
    %14 = vector.broadcast %13 : vector<16x1xf32> to vector<16x32xf32>
    %15 = arith.subf %7, %14 : vector<16x32xf32>
    %16 = arith.mulf %15, %15 : vector<16x32xf32>
    %cst_13 = arith.constant dense<0.000000e+00> : vector<16xf32>
    %17 = vector.multi_reduction <add>, %16, %cst_13 [1] : vector<16x32xf32> to vector<16xf32>
    %18 = vector.shape_cast %17 : vector<16xf32> to vector<16x1xf32>
    %cst_14 = arith.constant 3.200000e+01 : f32
    %19 = vector.broadcast %cst_14 : f32 to vector<16x1xf32>
    %20 = arith.divf %18, %19 : vector<16x1xf32>
    %21 = vector.broadcast %13 : vector<16x1xf32> to vector<16x32xf32>
    %22 = arith.subf %7, %21 : vector<16x32xf32>
    %cst_15 = arith.constant 9.99999974E-6 : f32
    %23 = vector.broadcast %cst_15 : f32 to vector<16x1xf32>
    %24 = arith.addf %20, %23 : vector<16x1xf32>
    %25 = math.rsqrt %24 : vector<16x1xf32>
    %26 = vector.broadcast %25 : vector<16x1xf32> to vector<16x32xf32>
    %27 = arith.mulf %22, %26 : vector<16x32xf32>
    %28 = vector.broadcast %8 : vector<1x32xf32> to vector<16x32xf32>
    %29 = arith.mulf %27, %28 : vector<16x32xf32>
    %30 = vector.broadcast %9 : vector<1x32xf32> to vector<16x32xf32>
    %31 = arith.addf %29, %30 : vector<16x32xf32>
    %c0_16 = arith.constant 0 : index
    %c0_17 = arith.constant 0 : index
    %32 = vector.load %arg7[%c0_16, %c0_17] : memref<16x32xf32, #tpu.memory_space<vmem>>, vector<16x32xf32>
    tpu.vector_store %arg7[%c0_16, %c0_17], %31 {strides = array<i32>} : memref<16x32xf32, #tpu.memory_space<vmem>>, vector<16x32xf32>,
    return
  }
  func.func @transform_0(%arg0: i32) -> (i32, i32) {
    %c0_i32 = arith.constant 0 : i32
    %c0_i32_0 = arith.constant 0 : i32
    return %arg0, %c0_i32 : i32, i32
  }
  func.func @transform_1(%arg0: i32) -> (i32, i32) {
    %c0_i32 = arith.constant 0 : i32
    %c0_i32_0 = arith.constant 0 : i32
    return %arg0, %c0_i32 : i32, i32
  }
  func.func @transform_2(%arg0: i32) -> (i32, i32) {
    %c0_i32 = arith.constant 0 : i32
    %c0_i32_0 = arith.constant 0 : i32
    %c0_i32_1 = arith.constant 0 : i32
    return %c0_i32, %c0_i32_0 : i32, i32
  }
  func.func @transform_3(%arg0: i32) -> (i32, i32) {
    %c0_i32 = arith.constant 0 : i32
    %c0_i32_0 = arith.constant 0 : i32
    %c0_i32_1 = arith.constant 0 : i32
    return %c0_i32, %c0_i32_0 : i32, i32
  }
  func.func @transform_4(%arg0: i32) -> (i32, i32) {
    %c0_i32 = arith.constant 0 : i32
    %c0_i32_0 = arith.constant 0 : i32
    %c0_i32_1 = arith.constant 0 : i32
    return %c0_i32, %c0_i32_0 : i32, i32
  }
  func.func @transform_5(%arg0: i32) -> (i32, i32) {
    %c0_i32 = arith.constant 0 : i32
    %c0_i32_0 = arith.constant 0 : i32
    %c0_i32_1 = arith.constant 0 : i32
    return %c0_i32, %c0_i32_0 : i32, i32
  }
  func.func @transform_6(%arg0: i32) -> (i32, i32) {
    %c0_i32 = arith.constant 0 : i32
    %c0_i32_0 = arith.constant 0 : i32
    return %arg0, %c0_i32 : i32, i32
  }
}

module attributes {stable_mosaic.version = 11 : i64} {
  func.func @_ffn_out_kernel(%arg0: i32, %arg1: memref<16x64xf32, #tpu.memory_space<vmem>>, %arg2: memref<16x32xf32, #tpu.memory_space<vmem>>, %arg3: memref<64x32xbf16, #tpu.memory_space<vmem>>, %arg4: memref<1x32xf32, #tpu.memory_space<vmem>>, %arg5: memref<1x32xf32, #tpu.memory_space<vmem>>, %arg6: memref<1x32xf32, #tpu.memory_space<vmem>>, %arg7: memref<16x32xf32, #tpu.memory_space<vmem>>) attributes {dimension_semantics = [#tpu.dimension_semantics<parallel>], iteration_bounds = array<i64: 1>, scalar_prefetch = 0 : i64, scratch_operands = 0 : i64, tpu.core_type = #tpu.core_type<tc>, window_params = [{transform_indices = @transform_0, window_bounds = array<i64: 16, 64>}, {transform_indices = @transform_1, window_bounds = array<i64: 16, 32>}, {pipeline_mode = #tpu.pipeline_mode<synchronous>, transform_indices = @transform_2, window_bounds = array<i64: 64, 32>}, {pipeline_mode = #tpu.pipeline_mode<synchronous>, transform_indices = @transform_3, window_bounds = array<i64: 1, 32>}, {pipeline_mode = #tpu.pipeline_mode<synchronous>, transform_indices = @transform_4, window_bounds = array<i64: 1, 32>}, {pipeline_mode = #tpu.pipeline_mode<synchronous>, transform_indices = @transform_5, window_bounds = array<i64: 1, 32>}, {transform_indices = @transform_6, window_bounds = array<i64: 16, 32>}]} {
    %c0 = arith.constant 0 : index
    %c0_0 = arith.constant 0 : index
    %0 = vector.load %arg1[%c0, %c0_0] : memref<16x64xf32, #tpu.memory_space<vmem>>, vector<16x64xf32>
    %1 = arith.truncf %0 : vector<16x64xf32> to vector<16x64xbf16>
    %c0_1 = arith.constant 0 : index
    %c0_2 = arith.constant 0 : index
    %2 = vector.load %arg3[%c0_1, %c0_2] : memref<64x32xbf16, #tpu.memory_space<vmem>>, vector<64x32xbf16>
    %cst = arith.constant dense<0.000000e+00> : vector<16x32xf32>
    %3 = tpu.matmul %1, %2, %cst {dimension_numbers = #tpu.dot_dimension_numbers<[1], [0], [0], [1], [0, 0, 1, 1], [], []>} : vector<16x64xbf16>, vector<64x32xbf16>, vector<16x32xf32> -> vector<16x32xf32>
    %c0_3 = arith.constant 0 : index
    %c0_4 = arith.constant 0 : index
    %4 = vector.load %arg4[%c0_3, %c0_4] : memref<1x32xf32, #tpu.memory_space<vmem>>, vector<1x32xf32>
    %5 = vector.broadcast %4 : vector<1x32xf32> to vector<16x32xf32>
    %6 = arith.addf %3, %5 : vector<16x32xf32>
    %c0_5 = arith.constant 0 : index
    %c0_6 = arith.constant 0 : index
    %7 = vector.load %arg2[%c0_5, %c0_6] : memref<16x32xf32, #tpu.memory_space<vmem>>, vector<16x32xf32>
    %8 = arith.addf %6, %7 : vector<16x32xf32>
    %c0_7 = arith.constant 0 : index
    %c0_8 = arith.constant 0 : index
    %9 = vector.load %arg5[%c0_7, %c0_8] : memref<1x32xf32, #tpu.memory_space<vmem>>, vector<1x32xf32>
    %c0_9 = arith.constant 0 : index
    %c0_10 = arith.constant 0 : index
    %10 = vector.load %arg6[%c0_9, %c0_10] : memref<1x32xf32, #tpu.memory_space<vmem>>, vector<1x32xf32>
    %cst_11 = arith.constant dense<0.000000e+00> : vector<16xf32>
    %11 = vector.multi_reduction <add>, %8, %cst_11 [1] : vector<16x32xf32> to vector<16xf32>
    %12 = vector.shape_cast %11 : vector<16xf32> to vector<16x1xf32>
    %cst_12 = arith.constant 3.200000e+01 : f32
    %13 = vector.broadcast %cst_12 : f32 to vector<16x1xf32>
    %14 = arith.divf %12, %13 : vector<16x1xf32>
    %15 = vector.broadcast %14 : vector<16x1xf32> to vector<16x32xf32>
    %16 = arith.subf %8, %15 : vector<16x32xf32>
    %17 = arith.mulf %16, %16 : vector<16x32xf32>
    %cst_13 = arith.constant dense<0.000000e+00> : vector<16xf32>
    %18 = vector.multi_reduction <add>, %17, %cst_13 [1] : vector<16x32xf32> to vector<16xf32>
    %19 = vector.shape_cast %18 : vector<16xf32> to vector<16x1xf32>
    %cst_14 = arith.constant 3.200000e+01 : f32
    %20 = vector.broadcast %cst_14 : f32 to vector<16x1xf32>
    %21 = arith.divf %19, %20 : vector<16x1xf32>
    %22 = vector.broadcast %14 : vector<16x1xf32> to vector<16x32xf32>
    %23 = arith.subf %8, %22 : vector<16x32xf32>
    %cst_15 = arith.constant 9.99999974E-6 : f32
    %24 = vector.broadcast %cst_15 : f32 to vector<16x1xf32>
    %25 = arith.addf %21, %24 : vector<16x1xf32>
    %26 = math.rsqrt %25 : vector<16x1xf32>
    %27 = vector.broadcast %26 : vector<16x1xf32> to vector<16x32xf32>
    %28 = arith.mulf %23, %27 : vector<16x32xf32>
    %29 = vector.broadcast %9 : vector<1x32xf32> to vector<16x32xf32>
    %30 = arith.mulf %28, %29 : vector<16x32xf32>
    %31 = vector.broadcast %10 : vector<1x32xf32> to vector<16x32xf32>
    %32 = arith.addf %30, %31 : vector<16x32xf32>
    %c0_16 = arith.constant 0 : index
    %c0_17 = arith.constant 0 : index
    %33 = vector.load %arg7[%c0_16, %c0_17] : memref<16x32xf32, #tpu.memory_space<vmem>>, vector<16x32xf32>
    tpu.vector_store %arg7[%c0_16, %c0_17], %32 {strides = array<i32>} : memref<16x32xf32, #tpu.memory_space<vmem>>, vector<16x32xf32>,
    return
  }
  func.func @transform_0(%arg0: i32) -> (i32, i32) {
    %c0_i32 = arith.constant 0 : i32
    %c0_i32_0 = arith.constant 0 : i32
    return %arg0, %c0_i32 : i32, i32
  }
  func.func @transform_1(%arg0: i32) -> (i32, i32) {
    %c0_i32 = arith.constant 0 : i32
    %c0_i32_0 = arith.constant 0 : i32
    return %arg0, %c0_i32 : i32, i32
  }
  func.func @transform_2(%arg0: i32) -> (i32, i32) {
    %c0_i32 = arith.constant 0 : i32
    %c0_i32_0 = arith.constant 0 : i32
    %c0_i32_1 = arith.constant 0 : i32
    return %c0_i32, %c0_i32_0 : i32, i32
  }
  func.func @transform_3(%arg0: i32) -> (i32, i32) {
    %c0_i32 = arith.constant 0 : i32
    %c0_i32_0 = arith.constant 0 : i32
    %c0_i32_1 = arith.constant 0 : i32
    return %c0_i32, %c0_i32_0 : i32, i32
  }
  func.func @transform_4(%arg0: i32) -> (i32, i32) {
    %c0_i32 = arith.constant 0 : i32
    %c0_i32_0 = arith.constant 0 : i32
    %c0_i32_1 = arith.constant 0 : i32
    return %c0_i32, %c0_i32_0 : i32, i32
  }
  func.func @transform_5(%arg0: i32) -> (i32, i32) {
    %c0_i32 = arith.constant 0 : i32
    %c0_i32_0 = arith.constant 0 : i32
    %c0_i32_1 = arith.constant 0 : i32
    return %c0_i32, %c0_i32_0 : i32, i32
  }
  func.func @transform_6(%arg0: i32) -> (i32, i32) {
    %c0_i32 = arith.constant 0 : i32
    %c0_i32_0 = arith.constant 0 : i32
    return %arg0, %c0_i32 : i32, i32
  }
}

module attributes {stable_mosaic.version = 11 : i64} {
  func.func @_ffn_in_kernel(%arg0: i32, %arg1: memref<16x32xf32, #tpu.memory_space<vmem>>, %arg2: memref<32x64xbf16, #tpu.memory_space<vmem>>, %arg3: memref<1x64xf32, #tpu.memory_space<vmem>>, %arg4: memref<1x64xf32, #tpu.memory_space<vmem>>, %arg5: memref<1x64xf32, #tpu.memory_space<vmem>>, %arg6: memref<16x64xf32, #tpu.memory_space<vmem>>) attributes {dimension_semantics = [#tpu.dimension_semantics<parallel>], iteration_bounds = array<i64: 1>, scalar_prefetch = 0 : i64, scratch_operands = 0 : i64, tpu.core_type = #tpu.core_type<tc>, window_params = [{transform_indices = @transform_0, window_bounds = array<i64: 16, 32>}, {pipeline_mode = #tpu.pipeline_mode<synchronous>, transform_indices = @transform_1, window_bounds = array<i64: 32, 64>}, {pipeline_mode = #tpu.pipeline_mode<synchronous>, transform_indices = @transform_2, window_bounds = array<i64: 1, 64>}, {pipeline_mode = #tpu.pipeline_mode<synchronous>, transform_indices = @transform_3, window_bounds = array<i64: 1, 64>}, {pipeline_mode = #tpu.pipeline_mode<synchronous>, transform_indices = @transform_4, window_bounds = array<i64: 1, 64>}, {transform_indices = @transform_5, window_bounds = array<i64: 16, 64>}]} {
    %c0 = arith.constant 0 : index
    %c0_0 = arith.constant 0 : index
    %0 = vector.load %arg1[%c0, %c0_0] : memref<16x32xf32, #tpu.memory_space<vmem>>, vector<16x32xf32>
    %1 = arith.truncf %0 : vector<16x32xf32> to vector<16x32xbf16>
    %c0_1 = arith.constant 0 : index
    %c0_2 = arith.constant 0 : index
    %2 = vector.load %arg2[%c0_1, %c0_2] : memref<32x64xbf16, #tpu.memory_space<vmem>>, vector<32x64xbf16>
    %cst = arith.constant dense<0.000000e+00> : vector<16x64xf32>
    %3 = tpu.matmul %1, %2, %cst {dimension_numbers = #tpu.dot_dimension_numbers<[1], [0], [0], [1], [0, 0, 1, 1], [], []>} : vector<16x32xbf16>, vector<32x64xbf16>, vector<16x64xf32> -> vector<16x64xf32>
    %c0_3 = arith.constant 0 : index
    %c0_4 = arith.constant 0 : index
    %4 = vector.load %arg3[%c0_3, %c0_4] : memref<1x64xf32, #tpu.memory_space<vmem>>, vector<1x64xf32>
    %5 = vector.broadcast %4 : vector<1x64xf32> to vector<16x64xf32>
    %6 = arith.addf %3, %5 : vector<16x64xf32>
    %cst_5 = arith.constant 0.000000e+00 : f32
    %7 = vector.broadcast %cst_5 : f32 to vector<16x64xf32>
    %8 = arith.maximumf %6, %7 : vector<16x64xf32>
    %c0_6 = arith.constant 0 : index
    %c0_7 = arith.constant 0 : index
    %9 = vector.load %arg4[%c0_6, %c0_7] : memref<1x64xf32, #tpu.memory_space<vmem>>, vector<1x64xf32>
    %c0_8 = arith.constant 0 : index
    %c0_9 = arith.constant 0 : index
    %10 = vector.load %arg5[%c0_8, %c0_9] : memref<1x64xf32, #tpu.memory_space<vmem>>, vector<1x64xf32>
    %cst_10 = arith.constant dense<0.000000e+00> : vector<16xf32>
    %11 = vector.multi_reduction <add>, %8, %cst_10 [1] : vector<16x64xf32> to vector<16xf32>
    %12 = vector.shape_cast %11 : vector<16xf32> to vector<16x1xf32>
    %cst_11 = arith.constant 6.400000e+01 : f32
    %13 = vector.broadcast %cst_11 : f32 to vector<16x1xf32>
    %14 = arith.divf %12, %13 : vector<16x1xf32>
    %15 = vector.broadcast %14 : vector<16x1xf32> to vector<16x64xf32>
    %16 = arith.subf %8, %15 : vector<16x64xf32>
    %17 = arith.mulf %16, %16 : vector<16x64xf32>
    %cst_12 = arith.constant dense<0.000000e+00> : vector<16xf32>
    %18 = vector.multi_reduction <add>, %17, %cst_12 [1] : vector<16x64xf32> to vector<16xf32>
    %19 = vector.shape_cast %18 : vector<16xf32> to vector<16x1xf32>
    %cst_13 = arith.constant 6.400000e+01 : f32
    %20 = vector.broadcast %cst_13 : f32 to vector<16x1xf32>
    %21 = arith.divf %19, %20 : vector<16x1xf32>
    %22 = vector.broadcast %14 : vector<16x1xf32> to vector<16x64xf32>
    %23 = arith.subf %8, %22 : vector<16x64xf32>
    %cst_14 = arith.constant 9.99999974E-6 : f32
    %24 = vector.broadcast %cst_14 : f32 to vector<16x1xf32>
    %25 = arith.addf %21, %24 : vector<16x1xf32>
    %26 = math.rsqrt %25 : vector<16x1xf32>
    %27 = vector.broadcast %26 : vector<16x1xf32> to vector<16x64xf32>
    %28 = arith.mulf %23, %27 : vector<16x64xf32>
    %29 = vector.broadcast %9 : vector<1x64xf32> to vector<16x64xf32>
    %30 = arith.mulf %28, %29 : vector<16x64xf32>
    %31 = vector.broadcast %10 : vector<1x64xf32> to vector<16x64xf32>
    %32 = arith.addf %30, %31 : vector<16x64xf32>
    %c0_15 = arith.constant 0 : index
    %c0_16 = arith.constant 0 : index
    %33 = vector.load %arg6[%c0_15, %c0_16] : memref<16x64xf32, #tpu.memory_space<vmem>>, vector<16x64xf32>
    tpu.vector_store %arg6[%c0_15, %c0_16], %32 {strides = array<i32>} : memref<16x64xf32, #tpu.memory_space<vmem>>, vector<16x64xf32>,
    return
  }
  func.func @transform_0(%arg0: i32) -> (i32, i32) {
    %c0_i32 = arith.constant 0 : i32
    %c0_i32_0 = arith.constant 0 : i32
    return %arg0, %c0_i32 : i32, i32
  }
  func.func @transform_1(%arg0: i32) -> (i32, i32) {
    %c0_i32 = arith.constant 0 : i32
    %c0_i32_0 = arith.constant 0 : i32
    %c0_i32_1 = arith.constant 0 : i32
    return %c0_i32, %c0_i32_0 : i32, i32
  }
  func.func @transform_2(%arg0: i32) -> (i32, i32) {
    %c0_i32 = arith.constant 0 : i32
    %c0_i32_0 = arith.constant 0 : i32
    %c0_i32_1 = arith.constant 0 : i32
    return %c0_i32, %c0_i32_0 : i32, i32
  }
  func.func @transform_3(%arg0: i32) -> (i32, i32) {
    %c0_i32 = arith.constant 0 : i32
    %c0_i32_0 = arith.constant 0 : i32
    %c0_i32_1 = arith.constant 0 : i32
    return %c0_i32, %c0_i32_0 : i32, i32
  }
  func.func @transform_4(%arg0: i32) -> (i32, i32) {
    %c0_i32 = arith.constant 0 : i32
    %c0_i32_0 = arith.constant 0 : i32
    %c0_i32_1 = arith.constant 0 : i32
    return %c0_i32, %c0_i32_0 : i32, i32
  }
  func.func @transform_5(%arg0: i32) -> (i32, i32) {
    %c0_i32 = arith.constant 0 : i32
    %c0_i32_0 = arith.constant 0 : i32
    return %arg0, %c0_i32 : i32, i32
  }
}

module attributes {stable_mosaic.version = 11 : i64} {
  func.func @_linear_kernel(%arg0: i32, %arg1: memref<16x32xf32, #tpu.memory_space<vmem>>, %arg2: memref<32x48xbf16, #tpu.memory_space<vmem>>, %arg3: memref<1x48xf32, #tpu.memory_space<vmem>>, %arg4: memref<16x48xf32, #tpu.memory_space<vmem>>) attributes {dimension_semantics = [#tpu.dimension_semantics<parallel>], iteration_bounds = array<i64: 1>, scalar_prefetch = 0 : i64, scratch_operands = 0 : i64, tpu.core_type = #tpu.core_type<tc>, window_params = [{transform_indices = @transform_0, window_bounds = array<i64: 16, 32>}, {pipeline_mode = #tpu.pipeline_mode<synchronous>, transform_indices = @transform_1, window_bounds = array<i64: 32, 48>}, {pipeline_mode = #tpu.pipeline_mode<synchronous>, transform_indices = @transform_2, window_bounds = array<i64: 1, 48>}, {transform_indices = @transform_3, window_bounds = array<i64: 16, 48>}]} {
    %c0 = arith.constant 0 : index
    %c0_0 = arith.constant 0 : index
    %0 = vector.load %arg1[%c0, %c0_0] : memref<16x32xf32, #tpu.memory_space<vmem>>, vector<16x32xf32>
    %1 = arith.truncf %0 : vector<16x32xf32> to vector<16x32xbf16>
    %c0_1 = arith.constant 0 : index
    %c0_2 = arith.constant 0 : index
    %2 = vector.load %arg2[%c0_1, %c0_2] : memref<32x48xbf16, #tpu.memory_space<vmem>>, vector<32x48xbf16>
    %cst = arith.constant dense<0.000000e+00> : vector<16x48xf32>
    %3 = tpu.matmul %1, %2, %cst {dimension_numbers = #tpu.dot_dimension_numbers<[1], [0], [0], [1], [0, 0, 1, 1], [], []>} : vector<16x32xbf16>, vector<32x48xbf16>, vector<16x48xf32> -> vector<16x48xf32>
    %c0_3 = arith.constant 0 : index
    %c0_4 = arith.constant 0 : index
    %4 = vector.load %arg3[%c0_3, %c0_4] : memref<1x48xf32, #tpu.memory_space<vmem>>, vector<1x48xf32>
    %5 = vector.broadcast %4 : vector<1x48xf32> to vector<16x48xf32>
    %6 = arith.addf %3, %5 : vector<16x48xf32>
    %c0_5 = arith.constant 0 : index
    %c0_6 = arith.constant 0 : index
    %7 = vector.load %arg4[%c0_5, %c0_6] : memref<16x48xf32, #tpu.memory_space<vmem>>, vector<16x48xf32>
    tpu.vector_store %arg4[%c0_5, %c0_6], %6 {strides = array<i32>} : memref<16x48xf32, #tpu.memory_space<vmem>>, vector<16x48xf32>,
    return
  }
  func.func @transform_0(%arg0: i32) -> (i32, i32) {
    %c0_i32 = arith.constant 0 : i32
    %c0_i32_0 = arith.constant 0 : i32
    return %arg0, %c0_i32 : i32, i32
  }
  func.func @transform_1(%arg0: i32) -> (i32, i32) {
    %c0_i32 = arith.constant 0 : i32
    %c0_i32_0 = arith.constant 0 : i32
    %c0_i32_1 = arith.constant 0 : i32
    return %c0_i32, %c0_i32_0 : i32, i32
  }
  func.func @transform_2(%arg0: i32) -> (i32, i32) {
    %c0_i32 = arith.constant 0 : i32
    %c0_i32_0 = arith.constant 0 : i32
    %c0_i32_1 = arith.constant 0 : i32
    return %c0_i32, %c0_i32_0 : i32, i32
  }
  func.func @transform_3(%arg0: i32) -> (i32, i32) {
    %c0_i32 = arith.constant 0 : i32
    %c0_i32_0 = arith.constant 0 : i32
    return %arg0, %c0_i32 : i32, i32
  }
}

module attributes {stable_mosaic.version = 11 : i64} {
  func.func @_linear_kernel(%arg0: i32, %arg1: memref<16x32xf32, #tpu.memory_space<vmem>>, %arg2: memref<32x64xbf16, #tpu.memory_space<vmem>>, %arg3: memref<1x64xf32, #tpu.memory_space<vmem>>, %arg4: memref<16x64xbf16, #tpu.memory_space<vmem>>) attributes {dimension_semantics = [#tpu.dimension_semantics<parallel>], iteration_bounds = array<i64: 1>, scalar_prefetch = 0 : i64, scratch_operands = 0 : i64, tpu.core_type = #tpu.core_type<tc>, window_params = [{transform_indices = @transform_0, window_bounds = array<i64: 16, 32>}, {pipeline_mode = #tpu.pipeline_mode<synchronous>, transform_indices = @transform_1, window_bounds = array<i64: 32, 64>}, {pipeline_mode = #tpu.pipeline_mode<synchronous>, transform_indices = @transform_2, window_bounds = array<i64: 1, 64>}, {transform_indices = @transform_3, window_bounds = array<i64: 16, 64>}]} {
    %c0 = arith.constant 0 : index
    %c0_0 = arith.constant 0 : index
    %0 = vector.load %arg1[%c0, %c0_0] : memref<16x32xf32, #tpu.memory_space<vmem>>, vector<16x32xf32>
    %1 = arith.truncf %0 : vector<16x32xf32> to vector<16x32xbf16>
    %c0_1 = arith.constant 0 : index
    %c0_2 = arith.constant 0 : index
    %2 = vector.load %arg2[%c0_1, %c0_2] : memref<32x64xbf16, #tpu.memory_space<vmem>>, vector<32x64xbf16>
    %cst = arith.constant dense<0.000000e+00> : vector<16x64xf32>
    %3 = tpu.matmul %1, %2, %cst {dimension_numbers = #tpu.dot_dimension_numbers<[1], [0], [0], [1], [0, 0, 1, 1], [], []>} : vector<16x32xbf16>, vector<32x64xbf16>, vector<16x64xf32> -> vector<16x64xf32>
    %c0_3 = arith.constant 0 : index
    %c0_4 = arith.constant 0 : index
    %4 = vector.load %arg3[%c0_3, %c0_4] : memref<1x64xf32, #tpu.memory_space<vmem>>, vector<1x64xf32>
    %5 = vector.broadcast %4 : vector<1x64xf32> to vector<16x64xf32>
    %6 = arith.addf %3, %5 : vector<16x64xf32>
    %7 = arith.truncf %6 : vector<16x64xf32> to vector<16x64xbf16>
    %c0_5 = arith.constant 0 : index
    %c0_6 = arith.constant 0 : index
    %8 = vector.load %arg4[%c0_5, %c0_6] : memref<16x64xbf16, #tpu.memory_space<vmem>>, vector<16x64xbf16>
    tpu.vector_store %arg4[%c0_5, %c0_6], %7 {strides = array<i32>} : memref<16x64xbf16, #tpu.memory_space<vmem>>, vector<16x64xbf16>,
    return
  }
  func.func @transform_0(%arg0: i32) -> (i32, i32) {
    %c0_i32 = arith.constant 0 : i32
    %c0_i32_0 = arith.constant 0 : i32
    return %arg0, %c0_i32 : i32, i32
  }
  func.func @transform_1(%arg0: i32) -> (i32, i32) {
    %c0_i32 = arith.constant 0 : i32
    %c0_i32_0 = arith.constant 0 : i32
    %c0_i32_1 = arith.constant 0 : i32
    return %c0_i32, %c0_i32_0 : i32, i32
  }
  func.func @transform_2(%arg0: i32) -> (i32, i32) {
    %c0_i32 = arith.constant 0 : i32
    %c0_i32_0 = arith.constant 0 : i32
    %c0_i32_1 = arith.constant 0 : i32
    return %c0_i32, %c0_i32_0 : i32, i32
  }
  func.func @transform_3(%arg0: i32) -> (i32, i32) {
    %c0_i32 = arith.constant 0 : i32
    %c0_i32_0 = arith.constant 0 : i32
    return %arg0, %c0_i32 : i32, i32
  }
}

</mosaic_0001>

<bundles_post_ra>
// kernel: transformer_fwd.42
= control target key start
LH: loop header
LB: loop body
LE: loop exit
PB: predicated region body
PF: predicated region fallthrough
CT: control target
= control target key end

     0   :  { %v124_v0 = vmov 0.0   ;;  %vm125_vm0 = vmmov 0   ;;  %vm41_vm1 = vcmask 261120   ;;  %vm94_vm2 = vcmask 257024   ;;  %s167_s1 = inlined_call_operand.vmem [shape: bf16[32,32], index: 1, kind: input, shape index: {}]   ;;  %s168_s0 = inlined_call_operand.vmem [shape: f32[16,32], index: 0, kind: input, shape index: {}]   ;;  %s169_s2 = inlined_call_operand.vmem [shape: f32[1,32], index: 2, kind: input, shape index: {}]   ;;  %s170_s3 = inlined_call_operand.vmem [shape: bf16[16,32], index: 3, kind: output, shape index: {}]  }
   0x1   :  { %112 = vmatprep.subr.bf16.mxu0 %v124_v0  ;;  %v122_v1 = vld [vmem:[%s167_s1] sm:$0xff]   ;;  %116 = vmatprep.mubr.msk.bf16.mxu0 %vm125_vm0, %v124_v0  ;;  %v123_v2 = vld [vmem:[%s167_s1 + $0x8] sm:$0xff]  }
   0x2   :  { %113 = vmatpush3.bf16.msra.mxu0 %v122_v1  ;;  %v15_v3 = vld [vmem:[%s168_s0] sm:$0xff]  ;;  %v16_v4 = vld [vmem:[%s168_s0 + $0x8] sm:$0xff] }
   0x3   :  { %114 = vmatprep.subr.bf16.mxu0 %v124_v0  ;;  %v17_v5 = vpack.c.bf16 %v16_v4, %v15_v3  ;;  %v101_v6 = vld [vmem:[%s169_s2] ss:$0 sm:$0xff] }
   0x6   :  { %115 = vmatpush3.bf16.msra.mxu0 %v123_v2 }
   0x9   :  { %117 = vmatmul.mubr.msk.bf16.vlgmr.msra.gmra.mrb[0].mxu0 %vm41_vm1, %v17_v5 }
  0xdc   :  { %v79_v7 = vpop.f32.mrb[0].mxu0 }
  0xdd   :  { %v80_v8 = vadd.f32 %v101_v6, %v79_v7  ;;  %v118_v9 = vpop.f32.mrb[1].mxu0 }
  0xde   :  { %v82_v10 = vpop.f32.mrb[2].mxu0 }
  0xdf   :  { %v107_v11 = vpack.c.bf16 %v80_v8, %v80_v8  ;;  %v83_v12 = vadd.f32 %v101_v6, %v82_v10  ;;  %v119_v13 = vpop.f32.mrb[3].mxu0 }
  0xe1   :  { %95 = vst.msk [vmem:[%s170_s3] sm:$0xf] %vm94_vm2, %v107_v11  ;;  %v108_v14 = vpack.c.bf16 %v83_v12, %v83_v12 }
  0xe3   :  { %96 = vst.msk [vmem:[%s170_s3 + $0x4] sm:$0xf] %vm94_vm2, %v108_v14 }

// kernel: transformer_fwd.39
= control target key start
LH: loop header
LB: loop body
LE: loop exit
PB: predicated region body
PF: predicated region fallthrough
CT: control target
= control target key end

     0   :  { %v124_v0 = vmov 0.0   ;;  %vm125_vm0 = vmmov 0   ;;  %vm41_vm1 = vcmask 261120   ;;  %vm94_vm2 = vcmask 781312   ;;  %s167_s1 = inlined_call_operand.vmem [shape: bf16[32,96], index: 1, kind: input, shape index: {}]   ;;  %s168_s0 = inlined_call_operand.vmem [shape: f32[16,32], index: 0, kind: input, shape index: {}]   ;;  %s169_s2 = inlined_call_operand.vmem [shape: f32[1,96], index: 2, kind: input, shape index: {}]   ;;  %s170_s3 = inlined_call_operand.vmem [shape: bf16[16,96], index: 3, kind: output, shape index: {}]  }
   0x1   :  { %112 = vmatprep.subr.bf16.mxu0 %v124_v0  ;;  %v122_v1 = vld [vmem:[%s167_s1] sm:$0xff]   ;;  %116 = vmatprep.mubr.msk.bf16.mxu0 %vm125_vm0, %v124_v0  ;;  %v123_v2 = vld [vmem:[%s167_s1 + $0x8] sm:$0xff]  }
   0x2   :  { %113 = vmatpush3.bf16.msra.mxu0 %v122_v1  ;;  %v15_v3 = vld [vmem:[%s168_s0] sm:$0xff]  ;;  %v16_v4 = vld [vmem:[%s168_s0 + $0x8] sm:$0xff] }
   0x3   :  { %114 = vmatprep.subr.bf16.mxu0 %v124_v0  ;;  %v17_v5 = vpack.c.bf16 %v16_v4, %v15_v3  ;;  %v101_v6 = vld [vmem:[%s169_s2] ss:$0 sm:$0xff] }
   0x6   :  { %115 = vmatpush3.bf16.msra.mxu0 %v123_v2 }
   0x9   :  { %117 = vmatmul.mubr.msk.bf16.vlgmr.msra.gmra.mrb[0].mxu0 %vm41_vm1, %v17_v5 }
  0xdc   :  { %v79_v7 = vpop.f32.mrb[0].mxu0 }
  0xdd   :  { %v80_v8 = vadd.f32 %v101_v6, %v79_v7  ;;  %v118_v9 = vpop.f32.mrb[1].mxu0 }
  0xde   :  { %v82_v10 = vpop.f32.mrb[2].mxu0 }
  0xdf   :  { %v107_v11 = vpack.c.bf16 %v80_v8, %v80_v8  ;;  %v83_v12 = vadd.f32 %v101_v6, %v82_v10  ;;  %v119_v13 = vpop.f32.mrb[3].mxu0 }
  0xe1   :  { %95 = vst.msk [vmem:[%s170_s3] sm:$0xf] %vm94_vm2, %v107_v11  ;;  %v108_v14 = vpack.c.bf16 %v83_v12, %v83_v12 }
  0xe3   :  { %96 = vst.msk [vmem:[%s170_s3 + $0x4] sm:$0xf] %vm94_vm2, %v108_v14 }

// kernel: transformer_fwd.40
= control target key start
LH: loop header
LB: loop body
LE: loop exit
PB: predicated region body
PF: predicated region fallthrough
CT: control target
= control target key end

     0   :  { %s952_s15 = smov 0   ;;  %s1037_s0 = inlined_call_operand.vmem [shape: bf16[8,8,8], index: 0, kind: input, shape index: {}]   ;;  %s1038_s1 = inlined_call_operand.vmem [shape: bf16[8,8,8], index: 1, kind: input, shape index: {}]   ;;  %s1039_s2 = inlined_call_operand.vmem [shape: bf16[8,8,8], index: 2, kind: input, shape index: {}]   ;;  %s1040_s3 = inlined_call_operand.vmem [shape: f32[2,8,8], index: 3, kind: input, shape index: {}]   ;;  %s1041_s4 = inlined_call_operand.vmem [shape: bf16[8,8,8], index: 4, kind: output, shape index: {}]  }
   0x1 LB: > { %s958_s16 = sadd.s32 4294967295, %s923_s15   ;;  %p807_p0 = scmp.ge.s32.totalorder %s923_s15, 1  ;;  %s923_s15 = sphi %s952_s15, %s14_s15  }
   0x2   : > { %p194_p1 = scmp.lt.s32.totalorder %s923_s15, 3 }
   0x4   : > { %p195_p2 = pnand %p807_p0, %p194_p1 }
   0x5   : > { %s808_s17 = sshll.u32 (!%p195_p2), %s958_s16, 2  ;;  %v925_v0 = vmov (!%p195_p2), 0.0   ;;  %vm926_vm0 = vmmov (!%p195_p2), 0   ;;  %vm271_vm1 = vcmask (!%p195_p2), 64512   ;;  %p252_p4 = scmp.lt.s32.totalorder (!%p195_p2), %s958_s16, 1  ;;  %vm520_vm2 = vcmask (!%p195_p2), 1043456  }
   0x6   : > { %198 = sbr.rel (%p195_p2) target bundleno = 784 (0x310), region = 36  ;;  %843 = vmatprep.subr.bf16.mxu0 (!%p195_p2), %v925_v0  ;;  %p235_p3 = scmp.lt.s32.totalorder (!%p195_p2), %s808_s17, 7  ;;  %849 = vmatprep.subr.bf16.mxu1 (!%p195_p2), %v925_v0  ;;  %vm706_vm3 = vcmask (!%p195_p2), 60416  }
   0x7   : > { %845 = vmatprep.mubr.msk.bf16.mxu0 (!%p195_p2), %vm926_vm0, %v925_v0  ;;  %851 = vmatprep.mubr.msk.bf16.mxu1 (!%p195_p2), %vm926_vm0, %v925_v0 }
   0xd   : > { %s1043_s17 = smov (!%p235_p3, %s808_s17), 7  ;;  %s1045_s16 = smov (!%p252_p4, %s958_s16), 1 }
   0xe   : > { %s969_s18 = sshll.u32 %s1043_s17, 2  ;;  %s814_s25 = sshll.u32 %s1045_s16, 3 }
   0xf   : > { %s244_s21 = scalar_lea.vmem %s1038_s1, %s969_s18  ;;  %s238_s24 = scalar_lea.vmem %s1037_s0, %s969_s18 }
  0x10   : > { %v267_v1 = vld [vmem:[%s244_s21] sm:$0xf]  ;;  %v268_v2 = vld [vmem:[%s244_s21 + $0x4] sm:$0xf]  ;;  %v269_v5 = vld [vmem:[%s244_s21 + $0x8] sm:$0xf]  ;;  %s255_s28 = scalar_lea.vmem %s1040_s3, %s814_s25  ;;  %s250_s5 = scalar_lea.vmem %s1039_s2, %s969_s18 }
  0x11   : > { %v276_v3 = vsel %vm271_vm1, %v267_v1, 0  ;;  %v322_v4 = vsel %vm271_vm1, %v268_v2, 0  ;;  %v270_v6 = vld [vmem:[%s244_s21 + $0xc] sm:$0xf]  ;;  %v263_v7 = vld [vmem:[%s238_s24] sm:$0xf]  ;;  %s260_s8 = scalar_lea.vmem %s1041_s4, %s969_s18 }
  0x12   : > { %844 = vmatpush3.bf16.xpose.msra.mxu0 %v276_v3  ;;  %850 = vmatpush3.bf16.xpose.msra.mxu1 %v322_v4  ;;  %v264_v8 = vld [vmem:[%s238_s24 + $0x4] sm:$0xf]  ;;  %v368_v9 = vsel %vm271_vm1, %v269_v5, 0  ;;  %v414_v10 = vsel %vm271_vm1, %v270_v6, 0  ;;  %v265_v11 = vld [vmem:[%s238_s24 + $0x8] sm:$0xf] }
  0x13   : > { %855 = vmatprep.subr.bf16.mxu0 %v925_v0  ;;  %861 = vmatprep.subr.bf16.mxu1 %v925_v0  ;;  %v266_v12 = vld [vmem:[%s238_s24 + $0xc] sm:$0xf]  ;;  %v460_v15 = vld [vmem:[%s255_s28] sm:$0xff]  ;;  %v515_v3 = vld [vmem:[%s250_s5 + $0x8] sm:$0xf] }
  0x14   : > { %v513_v62 = vld [vmem:[%s250_s5] sm:$0xf]  ;;  %v514_v1 = vld [vmem:[%s250_s5 + $0x4] sm:$0xf]  ;;  %v614_v4 = vsel %vm520_vm2, %v515_v3, 0 }
  0x15   : > { %v522_v63 = vsel %vm520_vm2, %v513_v62, 0  ;;  %v568_v2 = vsel %vm520_vm2, %v514_v1, 0  ;;  %v516_v5 = vld [vmem:[%s250_s5 + $0xc] sm:$0xf] }
  0x16   : > { %v660_v6 = vsel %vm520_vm2, %v516_v5, 0 }
  0x19   : > { %846 = vmatmul.mubr.msk.bf16.vlgmr.msra.gmra.mrb[0].mxu0 %vm271_vm1, %v263_v7  ;;  %852 = vmatmul.mubr.msk.bf16.vlgmr.msra.gmra.mrb[0].mxu1 %vm271_vm1, %v264_v8 }
  0x1a   : > { %856 = vmatpush3.bf16.xpose.msra.mxu0 %v368_v9  ;;  %862 = vmatpush3.bf16.xpose.msra.mxu1 %v414_v10 }
  0x1b   : > { %857 = vmatprep.mubr.msk.bf16.mxu0 %vm926_vm0, %v925_v0  ;;  %863 = vmatprep.mubr.msk.bf16.mxu1 %vm926_vm0, %v925_v0 }
  0x1c   : > { %867 = vmatprep.subr.bf16.mxu0 %v925_v0  ;;  %873 = vmatprep.subr.bf16.mxu1 %v925_v0 }
  0x21   : > { %858 = vmatmul.mubr.msk.bf16.vlgmr.msra.gmra.mrb[4].mxu0 %vm271_vm1, %v265_v11  ;;  %864 = vmatmul.mubr.msk.bf16.vlgmr.msra.gmra.mrb[4].mxu1 %vm271_vm1, %v266_v12 }
  0x22   : > { %869 = vmatprep.mubr.msk.bf16.mxu0 %vm926_vm0, %v925_v0  ;;  %875 = vmatprep.mubr.msk.bf16.mxu1 %vm926_vm0, %v925_v0 }
  0x23   : > { %868 = vmatpush3.bf16.msra.mxu0 %v522_v63  ;;  %874 = vmatpush3.bf16.msra.mxu1 %v568_v2 }
  0x24   : > { %879 = vmatprep.subr.bf16.mxu0 %v925_v0  ;;  %885 = vmatprep.subr.bf16.mxu1 %v925_v0 }
  0xec   : > { %v312_v13 = vpop.f32.mrb[0].mxu0  ;;  %v358_v14 = vpop.f32.mrb[0].mxu1 }
  0xed   : > { %v456_v16 = vmul.f32 0.35355338, %v312_v13  ;;  %v847_v17 = vpop.f32.mrb[1].mxu0  ;;  %v457_v18 = vmul.f32 0.35355338, %v358_v14  ;;  %v853_v19 = vpop.f32.mrb[1].mxu1 }
  0xee   : > { %v315_v20 = vpop.f32.mrb[2].mxu0  ;;  %v361_v21 = vpop.f32.mrb[2].mxu1 }
  0xef   : > { %v848_v22 = vpop.f32.mrb[3].mxu0  ;;  %v854_v23 = vpop.f32.mrb[3].mxu1  ;;  %v461_v24 = vadd.f32 %v460_v15, %v456_v16  ;;  %v462_v25 = vadd.f32 %v460_v15, %v457_v18 }
  0xf1   : > { %v465_v26 = vsel %vm271_vm1, %v461_v24, -inf  ;;  %v468_v27 = vsel %vm271_vm1, %v462_v25, -inf }
  0xf2   : > { %466 = vmax.xlane.f32.xlu0 %v465_v26 }
  0xf4   : > { %v404_v28 = vpop.f32.mrb[4].mxu0  ;;  %v450_v29 = vpop.f32.mrb[4].mxu1 }
  0xf5   : > { %v458_v30 = vmul.f32 0.35355338, %v404_v28  ;;  %v859_v31 = vpop.f32.mrb[5].mxu0  ;;  %v459_v32 = vmul.f32 0.35355338, %v450_v29  ;;  %v865_v33 = vpop.f32.mrb[5].mxu1 }
  0xf6   : > { %469 = vmax.xlane.f32.xlu0 %v468_v27  ;;  %v407_v34 = vpop.f32.mrb[6].mxu0  ;;  %v453_v35 = vpop.f32.mrb[6].mxu1 }
  0xf7   : > { %v860_v36 = vpop.f32.mrb[7].mxu0  ;;  %v866_v37 = vpop.f32.mrb[7].mxu1  ;;  %v463_v38 = vadd.f32 %v460_v15, %v458_v30  ;;  %v464_v39 = vadd.f32 %v460_v15, %v459_v32 }
  0xf9   : > { %v471_v40 = vsel %vm271_vm1, %v463_v38, -inf  ;;  %v474_v41 = vsel %vm271_vm1, %v464_v39, -inf }
  0xfa   : > { %472 = vmax.xlane.f32.xlu1 %v471_v40 }
  0xfe   : > { %475 = vmax.xlane.f32.xlu1 %v474_v41 }
 0x17f   : > { %v467_v42 = vpop.xlane.xlu0 %466 }
 0x180   : > { %v477_v43 = vsub.f32 %v461_v24, %v467_v42 }
 0x182   : > { %v481_v44 = vmul.f32 1.442695, %v477_v43 }
 0x183   : > { %v470_v45 = vpop.xlane.xlu0 %469 }
 0x184   : > { %901 = vpow2.f32 %v481_v44  ;;  %v478_v46 = vsub.f32 %v462_v25, %v470_v45 }
 0x186   : > { %v483_v47 = vmul.f32 1.442695, %v478_v46 }
 0x187   : > { %v473_v48 = vpop.xlane.xlu1 %472 }
 0x188   : > { %903 = vpow2.f32 %v483_v47  ;;  %v479_v49 = vsub.f32 %v463_v38, %v473_v48 }
 0x18a   : > { %v485_v50 = vmul.f32 1.442695, %v479_v49 }
 0x18b   : > { %v476_v51 = vpop.xlane.xlu1 %475 }
 0x18c   : > { %905 = vpow2.f32 %v485_v50  ;;  %v480_v52 = vsub.f32 %v464_v39, %v476_v51 }
 0x18e   : > { %v902_v53 = vpop.eup %901  ;;  %v487_v54 = vmul.f32 1.442695, %v480_v52 }
 0x18f   : > { %v489_v55 = vsel %vm271_vm1, %v902_v53, 0.0 }
 0x190   : > { %907 = vpow2.f32 %v487_v54  ;;  %490 = vadd.xlane.f32.xlu0 %v489_v55 }
 0x192   : > { %v904_v56 = vpop.eup %903 }
 0x193   : > { %v492_v57 = vsel %vm271_vm1, %v904_v56, 0.0 }
 0x194   : > { %493 = vadd.xlane.f32.xlu1 %v492_v57 }
 0x196   : > { %v906_v58 = vpop.eup %905 }
 0x197   : > { %v495_v59 = vsel %vm271_vm1, %v906_v58, 0.0 }
 0x198   : > { %496 = vadd.xlane.f32.xlu0 %v495_v59 }
 0x19a   : > { %v908_v60 = vpop.eup %907 }
 0x19b   : > { %v498_v61 = vsel %vm271_vm1, %v908_v60, 0.0 }
 0x19c   : > { %499 = vadd.xlane.f32.xlu1 %v498_v61 }
 0x21d   : > { %v491_v7 = vpop.xlane.xlu0 %490 }
 0x21e   : > { %909 = vrcp.f32 %v491_v7 }
 0x221   : > { %v494_v8 = vpop.xlane.xlu1 %493 }
 0x222   : > { %911 = vrcp.f32 %v494_v8 }
 0x225   : > { %v497_v9 = vpop.xlane.xlu0 %496 }
 0x226   : > { %913 = vrcp.f32 %v497_v9 }
 0x228   : > { %v910_v10 = vpop.eup %909 }
 0x229   : > { %v505_v11 = vmul.f32 %v910_v10, %v902_v53  ;;  %v500_v12 = vpop.xlane.xlu1 %499 }
 0x22a   : > { %915 = vrcp.f32 %v500_v12 }
 0x22b   : > { %v509_v13 = vpack.c.bf16 %v505_v11, %v505_v11 }
 0x22c   : > { %v912_v14 = vpop.eup %911 }
 0x22d   : > { %v506_v15 = vmul.f32 %v912_v14, %v904_v56  ;;  %870 = vmatmul.mubr.msk.bf16.vlgmr.msra.gmra.mrb[8].mxu0 %vm271_vm1, %v509_v13 }
 0x22e   : > { %880 = vmatpush3.bf16.msra.mxu0 %v614_v4  ;;  %881 = vmatprep.mubr.msk.bf16.mxu0 %vm926_vm0, %v925_v0 }
 0x22f   : > { %v510_v16 = vpack.c.bf16 %v506_v15, %v506_v15 }
 0x230   : > { %v914_v17 = vpop.eup %913 }
 0x231   : > { %v507_v18 = vmul.f32 %v914_v17, %v906_v58  ;;  %876 = vmatmul.mubr.msk.bf16.vlgmr.msra.gmra.mrb[8].mxu1 %vm271_vm1, %v510_v16 }
 0x232   : > { %886 = vmatpush3.bf16.msra.mxu1 %v660_v6  ;;  %887 = vmatprep.mubr.msk.bf16.mxu1 %vm926_vm0, %v925_v0 }
 0x233   : > { %v511_v19 = vpack.c.bf16 %v507_v18, %v507_v18 }
 0x234   : > { %v916_v20 = vpop.eup %915 }
 0x235   : > { %v508_v21 = vmul.f32 %v916_v20, %v908_v60  ;;  %882 = vmatmul.mubr.msk.bf16.vlgmr.msra.gmra.mrb[12].mxu0 %vm271_vm1, %v511_v19 }
 0x237   : > { %v512_v22 = vpack.c.bf16 %v508_v21, %v508_v21 }
 0x239   : > { %888 = vmatmul.mubr.msk.bf16.vlgmr.msra.gmra.mrb[12].mxu1 %vm271_vm1, %v512_v22 }
 0x300   : > { %v558_v23 = vpop.f32.mrb[8].mxu0 }
 0x301   : > { %v702_v24 = vpack.c.bf16 %v558_v23, %v558_v23  ;;  %v871_v25 = vpop.f32.mrb[9].mxu0 }
 0x302   : > { %v561_v26 = vpop.f32.mrb[10].mxu0 }
 0x303   : > { %707 = vst.msk [vmem:[%s260_s8] sm:$0xf] %vm706_vm3, %v702_v24  ;;  %v872_v0 = vpop.f32.mrb[11].mxu0 }
 0x304   : > { %v604_v27 = vpop.f32.mrb[8].mxu1 }
 0x305   : > { %v703_v28 = vpack.c.bf16 %v604_v27, %v604_v27  ;;  %v877_v29 = vpop.f32.mrb[9].mxu1 }
 0x306   : > { %v607_v30 = vpop.f32.mrb[10].mxu1 }
 0x307   : > { %708 = vst.msk [vmem:[%s260_s8 + $0x4] sm:$0xf] %vm706_vm3, %v703_v28  ;;  %v878_v31 = vpop.f32.mrb[11].mxu1 }
 0x308   : > { %v650_v32 = vpop.f32.mrb[12].mxu0 }
 0x309   : > { %v704_v33 = vpack.c.bf16 %v650_v32, %v650_v32  ;;  %v883_v34 = vpop.f32.mrb[13].mxu0 }
 0x30a   : > { %v653_v35 = vpop.f32.mrb[14].mxu0 }
 0x30b   : > { %709 = vst.msk [vmem:[%s260_s8 + $0x8] sm:$0xf] %vm706_vm3, %v704_v33  ;;  %v884_v36 = vpop.f32.mrb[15].mxu0 }
 0x30c   : > { %v696_v37 = vpop.f32.mrb[12].mxu1 }
 0x30d   : > { %v705_v38 = vpack.c.bf16 %v696_v37, %v696_v37  ;;  %v889_v39 = vpop.f32.mrb[13].mxu1 }
 0x30e   : > { %v699_v40 = vpop.f32.mrb[14].mxu1 }
 0x30f   : > { %710 = vst.msk [vmem:[%s260_s8 + $0xc] sm:$0xf] %vm706_vm3, %v705_v38  ;;  %v890_v41 = vpop.f32.mrb[15].mxu1 }
 0x310 PF: > { %s14_s15 = sadd.s32 1, %s923_s15  }
 0x311   : > { %p11_p5 = scmp.ge.s32.totalorder %s14_s15, 4  }
 0x313   :  { %13 = sbr.rel (!%p11_p5) target bundleno = 1 (0x1), region = 75 }

// kernel: transformer_fwd.41
= control target key start
LH: loop header
LB: loop body
LE: loop exit
PB: predicated region body
PF: predicated region fallthrough
CT: control target
= control target key end

     0   :  { %v181_v0 = vmov 0.0   ;;  %vm182_vm0 = vmmov 0   ;;  %vm54_vm1 = vcmask 261120   ;;  %s255_s2 = inlined_call_operand.vmem [shape: bf16[32,32], index: 2, kind: input, shape index: {}]   ;;  %s256_s0 = inlined_call_operand.vmem [shape: bf16[16,32], index: 0, kind: input, shape index: {}]   ;;  %s257_s3 = inlined_call_operand.vmem [shape: f32[1,32], index: 3, kind: input, shape index: {}]   ;;  %s258_s1 = inlined_call_operand.vmem [shape: f32[16,32], index: 1, kind: input, shape index: {}]   ;;  %s259_s4 = inlined_call_operand.vmem [shape: f32[1,32], index: 4, kind: input, shape index: {}]   ;;  %s260_s5 = inlined_call_operand.vmem [shape: f32[1,32], index: 5, kind: input, shape index: {}]   ;;  %s261_s6 = inlined_call_operand.vmem [shape: f32[16,32], index: 6, kind: output, shape index: {}]  }
   0x1   :  { %164 = vmatprep.subr.bf16.mxu0 %v181_v0  ;;  %v174_v1 = vld [vmem:[%s255_s2] sm:$0xff]   ;;  %168 = vmatprep.mubr.msk.bf16.mxu0 %vm182_vm0, %v181_v0  ;;  %v175_v2 = vld [vmem:[%s255_s2 + $0x8] sm:$0xff]  }
   0x2   :  { %165 = vmatpush3.bf16.msra.mxu0 %v174_v1  ;;  %v176_v3 = vld [vmem:[%s256_s0] sm:$0xff]   ;;  %v100_v10 = vld [vmem:[%s258_s1 + $0x8] sm:$0xff] }
   0x3   :  { %166 = vmatprep.subr.bf16.mxu0 %v181_v0  ;;  %v154_v4 = vld [vmem:[%s257_s3] ss:$0 sm:$0xff] }
   0x4   :  { %v99_v6 = vld [vmem:[%s258_s1] sm:$0xff] }
   0x5   :  { %v159_v34 = vld [vmem:[%s259_s4] ss:$0 sm:$0xff] }
   0x6   :  { %167 = vmatpush3.bf16.msra.mxu0 %v175_v2  ;;  %v160_v36 = vld [vmem:[%s260_s5] ss:$0 sm:$0xff] }
   0x9   :  { %169 = vmatmul.mubr.msk.bf16.vlgmr.msra.gmra.mrb[0].mxu0 %vm54_vm1, %v176_v3 }
  0xdc   :  { %v92_v5 = vpop.f32.mrb[0].mxu0 }
  0xdd   :  { %v93_v7 = vadd.f32 %v154_v4, %v92_v5  ;;  %v170_v8 = vpop.f32.mrb[1].mxu0 }
  0xde   :  { %v95_v9 = vpop.f32.mrb[2].mxu0 }
  0xdf   :  { %v96_v11 = vadd.f32 %v154_v4, %v95_v9  ;;  %v171_v12 = vpop.f32.mrb[3].mxu0  ;;  %v101_v13 = vadd.f32 %v99_v6, %v93_v7 }
  0xe1   :  { %v105_v14 = vsel %vm54_vm1, %v101_v13, 0.0  ;;  %v102_v15 = vadd.f32 %v100_v10, %v96_v11 }
  0xe2   :  { %106 = vadd.xlane.f32.xlu0 %v105_v14 }
  0xe3   :  { %v108_v16 = vsel %vm54_vm1, %v102_v15, 0.0 }
  0xe6   :  { %109 = vadd.xlane.f32.xlu0 %v108_v16 }
 0x16f   :  { %v107_v17 = vpop.xlane.xlu0 %106 }
 0x170   :  { %v112_v18 = vmul.f32 0.03125, %v107_v17 }
 0x172   :  { %v114_v19 = vsub.f32 %v101_v13, %v112_v18 }
 0x173   :  { %v110_v20 = vpop.xlane.xlu0 %109 }
 0x174   :  { %v113_v21 = vmul.f32 0.03125, %v110_v20  ;;  %v116_v22 = vmul.f32 %v114_v19, %v114_v19 }
 0x176   :  { %v115_v23 = vsub.f32 %v102_v15, %v113_v21  ;;  %v118_v24 = vsel %vm54_vm1, %v116_v22, 0.0 }
 0x177   :  { %119 = vadd.xlane.f32.xlu1 %v118_v24 }
 0x178   :  { %v117_v25 = vmul.f32 %v115_v23, %v115_v23 }
 0x17a   :  { %v121_v26 = vsel %vm54_vm1, %v117_v25, 0.0 }
 0x17b   :  { %122 = vadd.xlane.f32.xlu1 %v121_v26 }
 0x204   :  { %v120_v27 = vpop.xlane.xlu1 %119 }
 0x205   :  { %v124_v28 = vmul.f32 0.03125, %v120_v27 }
 0x207   :  { %v126_v29 = vadd.f32 1e-05, %v124_v28 }
 0x208   :  { %v123_v30 = vpop.xlane.xlu1 %122 }
 0x209   :  { %177 = vrsqrt.f32 %v126_v29  ;;  %v125_v31 = vmul.f32 0.03125, %v123_v30 }
 0x20b   :  { %v127_v32 = vadd.f32 1e-05, %v125_v31 }
 0x20d   :  { %179 = vrsqrt.f32 %v127_v32 }
 0x213   :  { %v178_v33 = vpop.eup %177 }
 0x214   :  { %v130_v35 = vmul.f32 %v178_v33, %v114_v19 }
 0x216   :  { %v138_v37 = vmul.f32 %v159_v34, %v130_v35 }
 0x217   :  { %v180_v38 = vpop.eup %179 }
 0x218   :  { %v146_v39 = vadd.f32 %v160_v36, %v138_v37  ;;  %v131_v40 = vmul.f32 %v180_v38, %v115_v23 }
 0x21a   :  { %148 = vst.msk [vmem:[%s261_s6] sm:$0xff] %vm54_vm1, %v146_v39  ;;  %v139_v41 = vmul.f32 %v159_v34, %v131_v40 }
 0x21c   :  { %v147_v42 = vadd.f32 %v160_v36, %v139_v41 }
 0x21e   :  { %149 = vst.msk [vmem:[%s261_s6 + $0x8] sm:$0xff] %vm54_vm1, %v147_v42 }

// kernel: transformer_fwd.32
= control target key start
LH: loop header
LB: loop body
LE: loop exit
PB: predicated region body
PF: predicated region fallthrough
CT: control target
= control target key end

     0   :  { %v171_v0 = vmov 0.0   ;;  %vm172_vm0 = vmmov 0   ;;  %vm47_vm1 = vcmask 261120   ;;  %vm96_vm2 = vcmask 523264   ;;  %s236_s1 = inlined_call_operand.vmem [shape: bf16[32,64], index: 1, kind: input, shape index: {}]   ;;  %s237_s0 = inlined_call_operand.vmem [shape: f32[16,32], index: 0, kind: input, shape index: {}]   ;;  %s238_s2 = inlined_call_operand.vmem [shape: f32[1,64], index: 2, kind: input, shape index: {}]   ;;  %s239_s3 = inlined_call_operand.vmem [shape: f32[1,64], index: 3, kind: input, shape index: {}]   ;;  %s240_s4 = inlined_call_operand.vmem [shape: f32[1,64], index: 4, kind: input, shape index: {}]   ;;  %s241_s5 = inlined_call_operand.vmem [shape: f32[16,64], index: 5, kind: output, shape index: {}]  }
   0x1   :  { %155 = vmatprep.subr.bf16.mxu0 %v171_v0  ;;  %v165_v1 = vld [vmem:[%s236_s1] sm:$0xff]   ;;  %159 = vmatprep.mubr.msk.bf16.mxu0 %vm172_vm0, %v171_v0  ;;  %v166_v2 = vld [vmem:[%s236_s1 + $0x8] sm:$0xff]  }
   0x2   :  { %156 = vmatpush3.bf16.msra.mxu0 %v165_v1  ;;  %v21_v3 = vld [vmem:[%s237_s0] sm:$0xff]  ;;  %v22_v4 = vld [vmem:[%s237_s0 + $0x8] sm:$0xff] }
   0x3   :  { %157 = vmatprep.subr.bf16.mxu0 %v171_v0  ;;  %v23_v5 = vpack.c.bf16 %v22_v4, %v21_v3  ;;  %v146_v6 = vld [vmem:[%s238_s2] ss:$0 sm:$0xff] }
   0x4   :  { %v150_v34 = vld [vmem:[%s239_s3] ss:$0 sm:$0xff] }
   0x5   :  { %v151_v36 = vld [vmem:[%s240_s4] ss:$0 sm:$0xff] }
   0x6   :  { %158 = vmatpush3.bf16.msra.mxu0 %v166_v2 }
   0x9   :  { %160 = vmatmul.mubr.msk.bf16.vlgmr.msra.gmra.mrb[0].mxu0 %vm47_vm1, %v23_v5 }
  0xdc   :  { %v85_v7 = vpop.f32.mrb[0].mxu0 }
  0xdd   :  { %v86_v8 = vadd.f32 %v146_v6, %v85_v7  ;;  %v161_v9 = vpop.f32.mrb[1].mxu0 }
  0xde   :  { %v88_v10 = vpop.f32.mrb[2].mxu0 }
  0xdf   :  { %v92_v11 = vmax.f32 %v86_v8, 0.0  ;;  %v89_v12 = vadd.f32 %v146_v6, %v88_v10  ;;  %v162_v13 = vpop.f32.mrb[3].mxu0 }
  0xe1   :  { %v93_v14 = vmax.f32 %v89_v12, 0.0  ;;  %v97_v15 = vsel %vm96_vm2, %v92_v11, 0.0 }
  0xe2   :  { %98 = vadd.xlane.f32.xlu0 %v97_v15 }
  0xe3   :  { %v100_v16 = vsel %vm96_vm2, %v93_v14, 0.0 }
  0xe6   :  { %101 = vadd.xlane.f32.xlu0 %v100_v16 }
 0x16f   :  { %v99_v17 = vpop.xlane.xlu0 %98 }
 0x170   :  { %v104_v18 = vmul.f32 0.015625, %v99_v17 }
 0x172   :  { %v106_v19 = vsub.f32 %v92_v11, %v104_v18 }
 0x173   :  { %v102_v20 = vpop.xlane.xlu0 %101 }
 0x174   :  { %v105_v21 = vmul.f32 0.015625, %v102_v20  ;;  %v108_v22 = vmul.f32 %v106_v19, %v106_v19 }
 0x176   :  { %v107_v23 = vsub.f32 %v93_v14, %v105_v21  ;;  %v110_v24 = vsel %vm96_vm2, %v108_v22, 0.0 }
 0x177   :  { %111 = vadd.xlane.f32.xlu1 %v110_v24 }
 0x178   :  { %v109_v25 = vmul.f32 %v107_v23, %v107_v23 }
 0x17a   :  { %v113_v26 = vsel %vm96_vm2, %v109_v25, 0.0 }
 0x17b   :  { %114 = vadd.xlane.f32.xlu1 %v113_v26 }
 0x204   :  { %v112_v27 = vpop.xlane.xlu1 %111 }
 0x205   :  { %v116_v28 = vmul.f32 0.015625, %v112_v27 }
 0x207   :  { %v118_v29 = vadd.f32 1e-05, %v116_v28 }
 0x208   :  { %v115_v30 = vpop.xlane.xlu1 %114 }
 0x209   :  { %167 = vrsqrt.f32 %v118_v29  ;;  %v117_v31 = vmul.f32 0.015625, %v115_v30 }
 0x20b   :  { %v119_v32 = vadd.f32 1e-05, %v117_v31 }
 0x20d   :  { %169 = vrsqrt.f32 %v119_v32 }
 0x213   :  { %v168_v33 = vpop.eup %167 }
 0x214   :  { %v122_v35 = vmul.f32 %v168_v33, %v106_v19 }
 0x216   :  { %v130_v37 = vmul.f32 %v150_v34, %v122_v35 }
 0x217   :  { %v170_v38 = vpop.eup %169 }
 0x218   :  { %v138_v39 = vadd.f32 %v151_v36, %v130_v37  ;;  %v123_v40 = vmul.f32 %v170_v38, %v107_v23 }
 0x21a   :  { %140 = vst.msk [vmem:[%s241_s5] sm:$0xff] %vm96_vm2, %v138_v39  ;;  %v131_v41 = vmul.f32 %v150_v34, %v123_v40 }
 0x21c   :  { %v139_v42 = vadd.f32 %v151_v36, %v131_v41 }
 0x21e   :  { %141 = vst.msk [vmem:[%s241_s5 + $0x8] sm:$0xff] %vm96_vm2, %v139_v42 }

// kernel: transformer_fwd.57
= control target key start
LH: loop header
LB: loop body
LE: loop exit
PB: predicated region body
PF: predicated region fallthrough
CT: control target
= control target key end

     0   :  { %v152_v1 = vmov 0.0   ;;  %vm153_vm0 = vmmov 0   ;;  %s204_s0 = inlined_call_operand.vmem [shape: f32[16,32], index: 0, kind: input, shape index: {}]   ;;  %s205_s1 = inlined_call_operand.vmem [shape: bf16[32,48], index: 1, kind: input, shape index: {}]   ;;  %s206_s2 = inlined_call_operand.vmem [shape: f32[1,48], index: 2, kind: input, shape index: {}]   ;;  %s207_s3 = inlined_call_operand.hbm [shape: f32[16,48], index: 3, kind: output, shape index: {}]  }
   0x1   :  { %v126_v0 = vld [vmem:[%s205_s1] sm:$0xff]   ;;  %113 = vmatprep.subr.bf16.mxu0 %v152_v1  ;;  %v127_v2 = vld [vmem:[%s205_s1 + $0x8] sm:$0xff]   ;;  %117 = vmatprep.mubr.msk.bf16.mxu0 %vm153_vm0, %v152_v1 }
   0x2   :  { %114 = vmatpush3.bf16.msra.mxu0 %v126_v0  ;;  %v16_v3 = vld [vmem:[%s204_s0] sm:$0xff]  ;;  %v17_v4 = vld [vmem:[%s204_s0 + $0x8] sm:$0xff] }
   0x3   :  { %115 = vmatprep.subr.bf16.mxu0 %v152_v1 }
   0x4   :  { %8 = vsyncpa [#allocation3], 0  ;;  %v18_v5 = vpack.c.bf16 %v17_v4, %v16_v3  ;;  %vm42_vm1 = vcmask 261120   ;;  %v106_v6 = vld [vmem:[%s206_s2] ss:$0 sm:$0xff]  ;;  %s154_s1 = smov [#allocation2]  }
   0x5   :  { %s95_s22 = sshll.u32 %s154_s1, 4  ;;  %vm87_vm2 = vcmask 392192   ;;  %s96_s22 = int_to_ptr.vmem [resolvable:$true] %s95_s22 }
   0x6   :  { %116 = vmatpush3.bf16.msra.mxu0 %v127_v2  ;;  %s128_s0 = scalar_lea.vmem %s96_s22, 256  ;;  %p133_p1 = scmp.lt.s32.totalorder %s96_s22, %s96_s22 }
   0x7   :  { %p129_p0 = scmp.ne.s32.totalorder %s96_s22, %s128_s0  ;;  %p134_p2 = scmp.lt.s32.totalorder %s128_s0, %s128_s0 }
   0x9   :  { %118 = vmatmul.mubr.msk.bf16.vlgmr.msra.gmra.mrb[0].mxu0 %vm42_vm1, %v18_v5  ;;  %p135_p3 = por %p134_p2, %p133_p1 }
   0xb   :  { %p136_p4 = pnand %p135_p3, %p129_p0 }
  0xdc   :  { %v80_v7 = vpop.f32.mrb[0].mxu0 }
  0xdd   :  { %v81_v8 = vadd.f32 %v106_v6, %v80_v7  ;;  %v119_v9 = vpop.f32.mrb[1].mxu0 }
  0xde   :  { %v83_v10 = vpop.f32.mrb[2].mxu0 }
  0xdf   :  { %88 = vst.msk [vmem:[#allocation2] sm:$0xff] %vm87_vm2, %v81_v8  ;;  %v84_v11 = vadd.f32 %v106_v6, %v83_v10  ;;  %v120_v12 = vpop.f32.mrb[3].mxu0 }
  0xe1   :  { %89 = vst.msk [vmem:[#allocation2 + $0x8] sm:$0xff] %vm87_vm2, %v84_v11 }
  0xe2   :  { %139 = shalt.err (!%p136_p4)
}
  0xe3   :  { %s140_s24 = scalar_lea.hbm %s207_s3, 256 }
  0xe4   :  { %p141_p5 = scmp.ne.s32.totalorder %s207_s3, %s140_s24  ;;  %p144_p6 = scmp.lt.u32.totalorder %s140_s24, %s207_s3 }
  0xe6   :  { %p146_p7 = pnand %p144_p6, %p141_p5 }
  0xe8   :  { %149 = shalt.err (!%p146_p7)
}
  0xe9   :  { %s155_s29 = smov 128   ;;  %s156_s30 = smov 8  }
  0xea   :  { %101 = dma.vmem_to_hbm [thread:$0]  %s96_s22, 256, %s207_s3, [#allocation3], %s155_s29, %s155_s29, %s156_s30  }
  0xeb   :  { %150 = dma.done.wait [#allocation3], 256  }
  0xec   :  { %151 = vsyncadd [#allocation3], 4294967040 }
  0xed   :  { %105 = vsyncpa [#allocation3], 1 }

// kernel: transformer_fwd.33
= control target key start
LH: loop header
LB: loop body
LE: loop exit
PB: predicated region body
PF: predicated region fallthrough
CT: control target
= control target key end

     0   :  { %v202_v0 = vmov 0.0   ;;  %vm203_vm0 = vmmov 0   ;;  %vm66_vm1 = vcmask 523264   ;;  %vm117_vm2 = vcmask 261120   ;;  %s284_s2 = inlined_call_operand.vmem [shape: bf16[64,32], index: 2, kind: input, shape index: {}]   ;;  %s285_s0 = inlined_call_operand.vmem [shape: f32[16,64], index: 0, kind: input, shape index: {}]   ;;  %s286_s3 = inlined_call_operand.vmem [shape: f32[1,32], index: 3, kind: input, shape index: {}]   ;;  %s287_s1 = inlined_call_operand.vmem [shape: f32[16,32], index: 1, kind: input, shape index: {}]   ;;  %s288_s4 = inlined_call_operand.vmem [shape: f32[1,32], index: 4, kind: input, shape index: {}]   ;;  %s289_s5 = inlined_call_operand.vmem [shape: f32[1,32], index: 5, kind: input, shape index: {}]   ;;  %s290_s6 = inlined_call_operand.vmem [shape: f32[16,32], index: 6, kind: output, shape index: {}]  }
   0x1   :  { %180 = vmatprep.subr.bf16.mxu0 %v202_v0  ;;  %v194_v1 = vld [vmem:[%s284_s2] sm:$0xff]   ;;  %188 = vmatprep.mubr.msk.bf16.mxu0 %vm203_vm0, %v202_v0  ;;  %v195_v2 = vld [vmem:[%s284_s2 + $0x8] sm:$0xff]   ;;  %v196_v3 = vld [vmem:[%s284_s2 + $0x10] sm:$0xff]  }
   0x2   :  { %181 = vmatpush3.bf16.msra.mxu0 %v194_v1  ;;  %v197_v4 = vld [vmem:[%s284_s2 + $0x18] sm:$0xff]   ;;  %v24_v5 = vld [vmem:[%s285_s0] sm:$0xff]  ;;  %v25_v6 = vld [vmem:[%s285_s0 + $0x8] sm:$0xff] }
   0x3   :  { %182 = vmatprep.subr.bf16.mxu0 %v202_v0  ;;  %v26_v7 = vpack.c.bf16 %v25_v6, %v24_v5  ;;  %v167_v8 = vld [vmem:[%s286_s3] ss:$0 sm:$0xff]  ;;  %v112_v14 = vld [vmem:[%s287_s1 + $0x8] sm:$0xff] }
   0x4   :  { %v111_v10 = vld [vmem:[%s287_s1] sm:$0xff] }
   0x5   :  { %v173_v38 = vld [vmem:[%s288_s4] ss:$0 sm:$0xff] }
   0x6   :  { %183 = vmatpush3.bf16.msra.mxu0 %v195_v2  ;;  %v174_v40 = vld [vmem:[%s289_s5] ss:$0 sm:$0xff] }
   0x7   :  { %184 = vmatprep.subr.bf16.mxu0 %v202_v0 }
   0xa   :  { %185 = vmatpush3.bf16.msra.mxu0 %v196_v3 }
   0xb   :  { %186 = vmatprep.subr.bf16.mxu0 %v202_v0 }
   0xe   :  { %187 = vmatpush3.bf16.msra.mxu0 %v197_v4 }
  0x11   :  { %189 = vmatmul.mubr.msk.bf16.vlgmr.msra.gmra.mrb[0].mxu0 %vm66_vm1, %v26_v7 }
  0xe4   :  { %v104_v9 = vpop.f32.mrb[0].mxu0 }
  0xe5   :  { %v105_v11 = vadd.f32 %v167_v8, %v104_v9  ;;  %v190_v12 = vpop.f32.mrb[1].mxu0 }
  0xe6   :  { %v107_v13 = vpop.f32.mrb[2].mxu0 }
  0xe7   :  { %v108_v15 = vadd.f32 %v167_v8, %v107_v13  ;;  %v191_v16 = vpop.f32.mrb[3].mxu0  ;;  %v113_v17 = vadd.f32 %v111_v10, %v105_v11 }
  0xe9   :  { %v118_v18 = vsel %vm117_vm2, %v113_v17, 0.0  ;;  %v114_v19 = vadd.f32 %v112_v14, %v108_v15 }
  0xea   :  { %119 = vadd.xlane.f32.xlu0 %v118_v18 }
  0xeb   :  { %v121_v20 = vsel %vm117_vm2, %v114_v19, 0.0 }
  0xee   :  { %122 = vadd.xlane.f32.xlu0 %v121_v20 }
 0x177   :  { %v120_v21 = vpop.xlane.xlu0 %119 }
 0x178   :  { %v125_v22 = vmul.f32 0.03125, %v120_v21 }
 0x17a   :  { %v127_v23 = vsub.f32 %v113_v17, %v125_v22 }
 0x17b   :  { %v123_v24 = vpop.xlane.xlu0 %122 }
 0x17c   :  { %v126_v25 = vmul.f32 0.03125, %v123_v24  ;;  %v129_v26 = vmul.f32 %v127_v23, %v127_v23 }
 0x17e   :  { %v128_v27 = vsub.f32 %v114_v19, %v126_v25  ;;  %v131_v28 = vsel %vm117_vm2, %v129_v26, 0.0 }
 0x17f   :  { %132 = vadd.xlane.f32.xlu1 %v131_v28 }
 0x180   :  { %v130_v29 = vmul.f32 %v128_v27, %v128_v27 }
 0x182   :  { %v134_v30 = vsel %vm117_vm2, %v130_v29, 0.0 }
 0x183   :  { %135 = vadd.xlane.f32.xlu1 %v134_v30 }
 0x20c   :  { %v133_v31 = vpop.xlane.xlu1 %132 }
 0x20d   :  { %v137_v32 = vmul.f32 0.03125, %v133_v31 }
 0x20f   :  { %v139_v33 = vadd.f32 1e-05, %v137_v32 }
 0x210   :  { %v136_v34 = vpop.xlane.xlu1 %135 }
 0x211   :  { %198 = vrsqrt.f32 %v139_v33  ;;  %v138_v35 = vmul.f32 0.03125, %v136_v34 }
 0x213   :  { %v140_v36 = vadd.f32 1e-05, %v138_v35 }
 0x215   :  { %200 = vrsqrt.f32 %v140_v36 }
 0x21b   :  { %v199_v37 = vpop.eup %198 }
 0x21c   :  { %v143_v39 = vmul.f32 %v199_v37, %v127_v23 }
 0x21e   :  { %v151_v41 = vmul.f32 %v173_v38, %v143_v39 }
 0x21f   :  { %v201_v42 = vpop.eup %200 }
 0x220   :  { %v159_v43 = vadd.f32 %v174_v40, %v151_v41  ;;  %v144_v44 = vmul.f32 %v201_v42, %v128_v27 }
 0x222   :  { %161 = vst.msk [vmem:[%s290_s6] sm:$0xff] %vm117_vm2, %v159_v43  ;;  %v152_v45 = vmul.f32 %v173_v38, %v144_v44 }
 0x224   :  { %v160_v46 = vadd.f32 %v174_v40, %v152_v45 }
 0x226   :  { %162 = vst.msk [vmem:[%s290_s6 + $0x8] sm:$0xff] %vm117_vm2, %v160_v46 }

// kernel: transformer_fwd.43
= control target key start
LH: loop header
LB: loop body
LE: loop exit
PB: predicated region body
PF: predicated region fallthrough
CT: control target
= control target key end

     0   :  { %v124_v0 = vmov 0.0   ;;  %vm125_vm0 = vmmov 0   ;;  %vm41_vm1 = vcmask 261120   ;;  %vm94_vm2 = vcmask 519168   ;;  %s167_s1 = inlined_call_operand.vmem [shape: bf16[32,64], index: 1, kind: input, shape index: {}]   ;;  %s168_s0 = inlined_call_operand.vmem [shape: f32[16,32], index: 0, kind: input, shape index: {}]   ;;  %s169_s2 = inlined_call_operand.vmem [shape: f32[1,64], index: 2, kind: input, shape index: {}]   ;;  %s170_s3 = inlined_call_operand.vmem [shape: bf16[16,64], index: 3, kind: output, shape index: {}]  }
   0x1   :  { %112 = vmatprep.subr.bf16.mxu0 %v124_v0  ;;  %v122_v1 = vld [vmem:[%s167_s1] sm:$0xff]   ;;  %116 = vmatprep.mubr.msk.bf16.mxu0 %vm125_vm0, %v124_v0  ;;  %v123_v2 = vld [vmem:[%s167_s1 + $0x8] sm:$0xff]  }
   0x2   :  { %113 = vmatpush3.bf16.msra.mxu0 %v122_v1  ;;  %v15_v3 = vld [vmem:[%s168_s0] sm:$0xff]  ;;  %v16_v4 = vld [vmem:[%s168_s0 + $0x8] sm:$0xff] }
   0x3   :  { %114 = vmatprep.subr.bf16.mxu0 %v124_v0  ;;  %v17_v5 = vpack.c.bf16 %v16_v4, %v15_v3  ;;  %v101_v6 = vld [vmem:[%s169_s2] ss:$0 sm:$0xff] }
   0x6   :  { %115 = vmatpush3.bf16.msra.mxu0 %v123_v2 }
   0x9   :  { %117 = vmatmul.mubr.msk.bf16.vlgmr.msra.gmra.mrb[0].mxu0 %vm41_vm1, %v17_v5 }
  0xdc   :  { %v79_v7 = vpop.f32.mrb[0].mxu0 }
  0xdd   :  { %v80_v8 = vadd.f32 %v101_v6, %v79_v7  ;;  %v118_v9 = vpop.f32.mrb[1].mxu0 }
  0xde   :  { %v82_v10 = vpop.f32.mrb[2].mxu0 }
  0xdf   :  { %v107_v11 = vpack.c.bf16 %v80_v8, %v80_v8  ;;  %v83_v12 = vadd.f32 %v101_v6, %v82_v10  ;;  %v119_v13 = vpop.f32.mrb[3].mxu0 }
  0xe1   :  { %95 = vst.msk [vmem:[%s170_s3] sm:$0xf] %vm94_vm2, %v107_v11  ;;  %v108_v14 = vpack.c.bf16 %v83_v12, %v83_v12 }
  0xe3   :  { %96 = vst.msk [vmem:[%s170_s3 + $0x4] sm:$0xf] %vm94_vm2, %v108_v14 }

</bundles_post_ra>
